<compile_context>
chip_gen: v7x
topology: tpu7x:2x2x1
jax: 0.10.0
libtpu: 0.0.40
codegen_flags: <defaults>
</compile_context>

<pallas_src>
import numpy as np
import jax
import jax.numpy as jnp
from jax.experimental import pallas as pl
from jax.experimental.pallas import tpu as pltpu

EPS = 1e-5


# ----------------------------- host-side packing ------------------------------

def _interp_matrix(n_out, n_in):
    """Row-stochastic bilinear interpolation matrix (align_corners=True)."""
    A = np.zeros((n_out, n_in), np.float32)
    for o in range(n_out):
        s = o * (n_in - 1) / (n_out - 1) if n_out > 1 else 0.0
        i0 = int(np.floor(s))
        i1 = min(i0 + 1, n_in - 1)
        f = s - i0
        A[o, i0] += 1.0 - f
        A[o, i1] += f
    return A


def _banded_conv_matrix(w_oihw, width):
    """Fold the W-taps + channel contraction of a 3x3 conv (padding=1) into a
    block-banded matrix per H-tap; returns (3, width*Cin, width*Cout)."""
    O, I, KH, KW = w_oihw.shape
    B = np.zeros((KH, width * I, width * O), np.float32)
    for ky in range(KH):
        for kx in range(KW):
            blk = w_oihw[:, :, ky, kx].T                     # (Cin, Cout)
            for wo in range(width):
                wi = wo - 1 + kx                              # zero-pad in W
                if 0 <= wi < width:
                    B[ky, wi * I:(wi + 1) * I, wo * O:(wo + 1) * O] = blk
    return B


# --------------------------------- the kernel ---------------------------------

def _make_upblock_kernel(N, H, W, Cin, Cout):
    NH = N * H
    inv_cnt = 1.0 / (N * H * W)
    f32, bf16 = jnp.float32, jnp.bfloat16

    def kernel(x_ref, awc_ref, ahn_ref, gexp_ref, gsel_ref,
               bw1_ref, g1_ref, be1_ref,
               bw2_ref, g2_ref, be2_ref,
               wsb_ref, gs_ref, bes_ref,
               out_ref):

        # ---- bilinear upsample (align_corners=True) as two bf16 lane-dense matmuls
        t = jnp.dot(x_ref[...], awc_ref[...],
                    preferred_element_type=f32)               # (N*Hin, W*Cin)
        u = jnp.dot(ahn_ref[...], t.astype(bf16),
                    preferred_element_type=f32)               # (N*H,  W*Cin) f32
        u16 = u.astype(bf16)                                  # reused by conv1 + shortcut

        # per-image H-boundary masks for the shifted conv taps (shared by both convs)
        hidx = jax.lax.broadcasted_iota(jnp.int32, (NH, 1), 0) % H
        top_ok = hidx != 0                                    # row h-1 exists
        bot_ok = hidx != (H - 1)                              # row h+1 exists

        def conv3x3(z32, z16, bw_ref):
            # 3 H-taps = sublane rolls of the slab (XLU), boundary rows zeroed;
            # one bf16 matmul per tap, accumulated in one f32 accumulator
            # (W-taps + channel contraction are folded into the banded weights).
            up = jnp.where(top_ok, pltpu.roll(z32, 1, axis=0), 0.0).astype(bf16)
            dn = jnp.where(bot_ok, pltpu.roll(z32, NH - 1, axis=0), 0.0).astype(bf16)
            acc = jnp.dot(up, bw_ref[0], preferred_element_type=f32)
            acc += jnp.dot(z16, bw_ref[1], preferred_element_type=f32)
            acc += jnp.dot(dn, bw_ref[2], preferred_element_type=f32)
            return acc                                         # (N*H, W*Cout) f32

        def batchnorm(z, g_ref, be_ref, relu):
            # training-mode BN, one-pass batch stats:
            # both per-channel reductions in ONE gsel matmul, one gexp expansion.
            stats = jnp.concatenate(
                [jnp.sum(z, axis=0, keepdims=True),
                 jnp.sum(z * z, axis=0, keepdims=True)], axis=0)        # (2, W*Cout)
            sc = jnp.dot(stats, gsel_ref[...],
                         preferred_element_type=f32) * inv_cnt          # (2, Cout)
            mean = sc[0:1, :]
            var = sc[1:2, :] - mean * mean
            s = g_ref[...] * jax.lax.rsqrt(var + EPS)                    # (1, Cout)
            b = be_ref[...] - mean * s
            sb = jnp.dot(jnp.concatenate([s, b], axis=0), gexp_ref[...],
                         preferred_element_type=f32)                     # (2, W*Cout)
            y = z * sb[0:1, :] + sb[1:2, :]
            return jnp.maximum(y, 0.0) if relu else y

        # main branch: conv3x3 -> BN -> ReLU -> conv3x3 -> BN
        y1 = batchnorm(conv3x3(u, u16, bw1_ref), g1_ref, be1_ref, relu=True)
        y2 = batchnorm(conv3x3(y1, y1.astype(bf16), bw2_ref), g2_ref, be2_ref,
                       relu=False)

        # shortcut branch: 1x1 conv (block-diagonal matmul) -> BN
        zsc = jnp.dot(u16, wsb_ref[...], preferred_element_type=f32)
        ysc = batchnorm(zsc, gs_ref, bes_ref, relu=False)

        out_ref[...] = jnp.maximum(y2 + ysc, 0.0)              # (N*H, W*Cout), lane-dense

    return kernel


# ---------------------------------- wrapper ------------------------------------

def upblock_forward(x_nchw, params, scale):
    N, Cin, Hin, Win = x_nchw.shape
    H, W = Hin * scale, Win * scale
    Cout = params["w1"].shape[0]
    f32, bf16 = jnp.float32, jnp.bfloat16

    # host-side (numpy) constant packing of interpolation / conv weights
    ah = _interp_matrix(H, Hin)
    aw = _interp_matrix(W, Win)
    awc = jnp.asarray(np.kron(aw.T, np.eye(Cin, dtype=np.float32))).astype(bf16)  # (Win*Cin, W*Cin)
    ahn = jnp.asarray(np.kron(np.eye(N, dtype=np.float32), ah)).astype(bf16)      # (N*H, N*Hin)
    eye_c = np.eye(Cout, dtype=np.float32)
    gexp = jnp.asarray(np.kron(np.ones((1, W), np.float32), eye_c))               # (Cout, W*Cout)
    gsel = jnp.asarray(np.kron(np.ones((W, 1), np.float32), eye_c))               # (W*Cout, Cout)
    bw1 = jnp.asarray(_banded_conv_matrix(np.asarray(params["w1"]), W)).astype(bf16)  # (3, W*Cin, W*Cout)
    bw2 = jnp.asarray(_banded_conv_matrix(np.asarray(params["w2"]), W)).astype(bf16)  # (3, W*Cout, W*Cout)
    wsb = jnp.asarray(np.kron(np.eye(W, dtype=np.float32),
                              np.asarray(params["ws"]).T)).astype(bf16)           # (W*Cin, W*Cout)

    def row(name):   # BN affine params as (1, Cout) f32
        return jnp.asarray(params[name], f32).reshape(1, Cout)

    # NCHW -> (N*Hin, Win*Cin) bf16 slab; tiny pre-upsample input, one cheap XLA op
    x2d = jnp.transpose(x_nchw, (0, 2, 3, 1)).reshape(N * Hin, Win * Cin).astype(bf16)

    vmem = pl.BlockSpec(memory_space=pltpu.MemorySpace.VMEM)
    args = (x2d, awc, ahn, gexp, gsel,
            bw1, row("g1"), row("be1"),
            bw2, row("g2"), row("be2"),
            wsb, row("gs"), row("bes"))

    out2d = pl.pallas_call(
        _make_upblock_kernel(N, H, W, Cin, Cout),
        out_shape=jax.ShapeDtypeStruct((N * H, W * Cout), f32),
        in_specs=[vmem] * len(args),
        out_specs=vmem,
    )(*args)

    # (N*H, W*Cout) -> NCHW: layout plumbing on the small final output only
    return jnp.transpose(out2d.reshape(N, H, W, Cout), (0, 3, 1, 2))


# ------------------------------ pure-JAX reference ------------------------------

def ref_forward(x_nchw, p, scale):
    N, C, Hin, Win = x_nchw.shape
    Hout, Wout = Hin * scale, Win * scale
    ah = jnp.asarray(_interp_matrix(Hout, Hin))
    aw = jnp.asarray(_interp_matrix(Wout, Win))
    xu = jnp.einsum("oh,nchw->ncow", ah, x_nchw)
    xu = jnp.einsum("pw,ncow->ncop", aw, xu)
    x = jnp.transpose(xu, (0, 2, 3, 1))                        # NHWC

    def conv3(z, w, b):
        w_hwio = jnp.transpose(w, (2, 3, 1, 0))
        y = jax.lax.conv_general_dilated(
            z, w_hwio, (1, 1), "SAME",
            dimension_numbers=("NHWC", "HWIO", "NHWC"))
        return y + b.reshape(1, 1, 1, -1)

    def bn(z, g, be):
        mean = jnp.mean(z, axis=(0, 1, 2), keepdims=True)
        var = jnp.mean((z - mean) ** 2, axis=(0, 1, 2), keepdims=True)
        return (z - mean) / jnp.sqrt(var + EPS) * g.reshape(1, 1, 1, -1) \
            + be.reshape(1, 1, 1, -1)

    y1 = jax.nn.relu(bn(conv3(x, p["w1"], p["b1"]), p["g1"], p["be1"]))
    y2 = bn(conv3(y1, p["w2"], p["b2"]), p["g2"], p["be2"])
    ysc = bn(jnp.einsum("nhwi,oi->nhwo", x, p["ws"]) + p["bs"].reshape(1, 1, 1, -1),
             p["gs"], p["bes"])
    return jnp.transpose(jax.nn.relu(y2 + ysc), (0, 3, 1, 2))


# ---------------------------------------------------------------------------------

if __name__ == "__main__":
    in_c, out_c, scale = 4, 8, 2
    N, H, W = 2, 16, 16

    key = jax.random.PRNGKey(0)
    ks = jax.random.split(key, 16)
    f32 = jnp.float32
    params = dict(
        w1=0.1 * jax.random.normal(ks[0], (out_c, in_c, 3, 3), f32),
        b1=0.1 * jax.random.normal(ks[1], (out_c,), f32),
        g1=1.0 + 0.1 * jax.random.normal(ks[2], (out_c,), f32),
        be1=0.1 * jax.random.normal(ks[3], (out_c,), f32),
        w2=0.1 * jax.random.normal(ks[4], (out_c, out_c, 3, 3), f32),
        b2=0.1 * jax.random.normal(ks[5], (out_c,), f32),
        g2=1.0 + 0.1 * jax.random.normal(ks[6], (out_c,), f32),
        be2=0.1 * jax.random.normal(ks[7], (out_c,), f32),
        ws=0.1 * jax.random.normal(ks[8], (out_c, in_c), f32),
        bs=0.1 * jax.random.normal(ks[9], (out_c,), f32),
        gs=1.0 + 0.1 * jax.random.normal(ks[10], (out_c,), f32),
        bes=0.1 * jax.random.normal(ks[11], (out_c,), f32),
    )
    x = jax.random.normal(ks[12], (N, in_c, H, W), f32)        # NCHW like PyTorch

    out = jax.block_until_ready(upblock_forward(x, params, scale))
    ref = jax.block_until_ready(ref_forward(x, params, scale))

    assert out.shape == (N, out_c, H * scale, W * scale), out.shape
    np.testing.assert_allclose(np.asarray(out), np.asarray(ref),
                               rtol=5e-2, atol=5e-2)
    print("KERNEL_OK")
</pallas_src>

<mosaic_0001>
module attributes {stable_mosaic.version = 11 : i64} {
  func.func @kernel(%arg0: memref<32x64xbf16, #tpu.memory_space<vmem>>, %arg1: memref<64x128xbf16, #tpu.memory_space<vmem>>, %arg2: memref<64x32xbf16, #tpu.memory_space<vmem>>, %arg3: memref<8x256xf32, #tpu.memory_space<vmem>>, %arg4: memref<256x8xf32, #tpu.memory_space<vmem>>, %arg5: memref<3x128x256xbf16, #tpu.memory_space<vmem>>, %arg6: memref<1x8xf32, #tpu.memory_space<vmem>>, %arg7: memref<1x8xf32, #tpu.memory_space<vmem>>, %arg8: memref<3x256x256xbf16, #tpu.memory_space<vmem>>, %arg9: memref<1x8xf32, #tpu.memory_space<vmem>>, %arg10: memref<1x8xf32, #tpu.memory_space<vmem>>, %arg11: memref<128x256xbf16, #tpu.memory_space<vmem>>, %arg12: memref<1x8xf32, #tpu.memory_space<vmem>>, %arg13: memref<1x8xf32, #tpu.memory_space<vmem>>, %arg14: memref<64x256xf32, #tpu.memory_space<vmem>>) attributes {dimension_semantics = [], scalar_prefetch = 0 : i64, scratch_operands = 0 : i64, tpu.core_type = #tpu.core_type<tc>} {
    %c0 = arith.constant 0 : index
    %c0_0 = arith.constant 0 : index
    %0 = vector.load %arg0[%c0, %c0_0] : memref<32x64xbf16, #tpu.memory_space<vmem>>, vector<32x64xbf16>
    %c0_1 = arith.constant 0 : index
    %c0_2 = arith.constant 0 : index
    %1 = vector.load %arg1[%c0_1, %c0_2] : memref<64x128xbf16, #tpu.memory_space<vmem>>, vector<64x128xbf16>
    %cst = arith.constant dense<0.000000e+00> : vector<32x128xf32>
    %2 = tpu.matmul %0, %1, %cst {dimension_numbers = #tpu.dot_dimension_numbers<[1], [0], [0], [1], [0, 0, 1, 1], [], []>} : vector<32x64xbf16>, vector<64x128xbf16>, vector<32x128xf32> -> vector<32x128xf32>
    %c0_3 = arith.constant 0 : index
    %c0_4 = arith.constant 0 : index
    %3 = vector.load %arg2[%c0_3, %c0_4] : memref<64x32xbf16, #tpu.memory_space<vmem>>, vector<64x32xbf16>
    %4 = arith.truncf %2 : vector<32x128xf32> to vector<32x128xbf16>
    %cst_5 = arith.constant dense<0.000000e+00> : vector<64x128xf32>
    %5 = tpu.matmul %3, %4, %cst_5 {dimension_numbers = #tpu.dot_dimension_numbers<[1], [0], [0], [1], [0, 0, 1, 1], [], []>} : vector<64x32xbf16>, vector<32x128xbf16>, vector<64x128xf32> -> vector<64x128xf32>
    %6 = arith.truncf %5 : vector<64x128xf32> to vector<64x128xbf16>
    %7 = tpu.iota {dimensions = array<i32: 0>} : vector<64x1xi32>
    %c32_i32 = arith.constant 32 : i32
    %c0_i32 = arith.constant 0 : i32
    %8 = arith.cmpi eq, %c32_i32, %c0_i32 : i32
    %c1_i32 = arith.constant 1 : i32
    %9 = arith.select %8, %c1_i32, %c32_i32 : i32
    %10 = vector.broadcast %9 : i32 to vector<64x1xi32>
    %11 = arith.remsi %7, %10 : vector<64x1xi32>
    %c0_i32_6 = arith.constant 0 : i32
    %12 = vector.broadcast %c0_i32_6 : i32 to vector<64x1xi32>
    %13 = arith.cmpi ne, %11, %12 : vector<64x1xi32>
    %c0_i32_7 = arith.constant 0 : i32
    %14 = vector.broadcast %c0_i32_7 : i32 to vector<64x1xi32>
    %15 = arith.cmpi slt, %11, %14 : vector<64x1xi32>
    %c0_i32_8 = arith.constant 0 : i32
    %16 = arith.cmpi slt, %9, %c0_i32_8 : i32
    %17 = vector.broadcast %16 : i1 to vector<64x1xi1>
    %18 = vector.broadcast %17 : vector<64x1xi1> to vector<64x1xi1>
    %19 = arith.xori %15, %18 : vector<64x1xi1>
    %20 = arith.andi %19, %13 : vector<64x1xi1>
    %21 = vector.broadcast %9 : i32 to vector<64x1xi32>
    %22 = arith.addi %11, %21 : vector<64x1xi32>
    %23 = arith.select %20, %22, %11 : vector<64x1xi1>, vector<64x1xi32>
    %c0_i32_9 = arith.constant 0 : i32
    %24 = vector.broadcast %c0_i32_9 : i32 to vector<64x1xi32>
    %25 = arith.cmpi ne, %23, %24 : vector<64x1xi32>
    %c31_i32 = arith.constant 31 : i32
    %26 = vector.broadcast %c31_i32 : i32 to vector<64x1xi32>
    %27 = arith.cmpi ne, %23, %26 : vector<64x1xi32>
    %c1_i32_10 = arith.constant 1 : i32
    %28 = tpu.dynamic_rotate %5 by %c1_i32_10 dim 0 : vector<64x128xf32>, i32 -> vector<64x128xf32>
    %cst_11 = arith.constant 0.000000e+00 : f32
    %29 = vector.shape_cast %25 : vector<64x1xi1> to vector<64x1xi1>
    %30 = vector.broadcast %29 : vector<64x1xi1> to vector<64x128xi1>
    %31 = vector.broadcast %cst_11 : f32 to vector<64x128xf32>
    %32 = arith.select %30, %28, %31 : vector<64x128xi1>, vector<64x128xf32>
    %33 = arith.truncf %32 : vector<64x128xf32> to vector<64x128xbf16>
    %c63_i32 = arith.constant 63 : i32
    %34 = tpu.dynamic_rotate %5 by %c63_i32 dim 0 : vector<64x128xf32>, i32 -> vector<64x128xf32>
    %cst_12 = arith.constant 0.000000e+00 : f32
    %35 = vector.shape_cast %27 : vector<64x1xi1> to vector<64x1xi1>
    %36 = vector.broadcast %35 : vector<64x1xi1> to vector<64x128xi1>
    %37 = vector.broadcast %cst_12 : f32 to vector<64x128xf32>
    %38 = arith.select %36, %34, %37 : vector<64x128xi1>, vector<64x128xf32>
    %39 = arith.truncf %38 : vector<64x128xf32> to vector<64x128xbf16>
    %c0_13 = arith.constant 0 : index
    %c0_14 = arith.constant 0 : index
    %c0_15 = arith.constant 0 : index
    %40 = vector.load %arg5[%c0_13, %c0_14, %c0_15] : memref<3x128x256xbf16, #tpu.memory_space<vmem>>, vector<1x128x256xbf16>
    %41 = vector.shape_cast %40 : vector<1x128x256xbf16> to vector<128x256xbf16>
    %cst_16 = arith.constant dense<0.000000e+00> : vector<64x256xf32>
    %42 = tpu.matmul %33, %41, %cst_16 {dimension_numbers = #tpu.dot_dimension_numbers<[1], [0], [0], [1], [0, 0, 1, 1], [], []>} : vector<64x128xbf16>, vector<128x256xbf16>, vector<64x256xf32> -> vector<64x256xf32>
    %c1 = arith.constant 1 : index
    %c0_17 = arith.constant 0 : index
    %c0_18 = arith.constant 0 : index
    %43 = vector.load %arg5[%c1, %c0_17, %c0_18] : memref<3x128x256xbf16, #tpu.memory_space<vmem>>, vector<1x128x256xbf16>
    %44 = vector.shape_cast %43 : vector<1x128x256xbf16> to vector<128x256xbf16>
    %cst_19 = arith.constant dense<0.000000e+00> : vector<64x256xf32>
    %45 = tpu.matmul %6, %44, %cst_19 {dimension_numbers = #tpu.dot_dimension_numbers<[1], [0], [0], [1], [0, 0, 1, 1], [], []>} : vector<64x128xbf16>, vector<128x256xbf16>, vector<64x256xf32> -> vector<64x256xf32>
    %46 = arith.addf %42, %45 : vector<64x256xf32>
    %c2 = arith.constant 2 : index
    %c0_20 = arith.constant 0 : index
    %c0_21 = arith.constant 0 : index
    %47 = vector.load %arg5[%c2, %c0_20, %c0_21] : memref<3x128x256xbf16, #tpu.memory_space<vmem>>, vector<1x128x256xbf16>
    %48 = vector.shape_cast %47 : vector<1x128x256xbf16> to vector<128x256xbf16>
    %cst_22 = arith.constant dense<0.000000e+00> : vector<64x256xf32>
    %49 = tpu.matmul %39, %48, %cst_22 {dimension_numbers = #tpu.dot_dimension_numbers<[1], [0], [0], [1], [0, 0, 1, 1], [], []>} : vector<64x128xbf16>, vector<128x256xbf16>, vector<64x256xf32> -> vector<64x256xf32>
    %50 = arith.addf %46, %49 : vector<64x256xf32>
    %cst_23 = arith.constant dense<0.000000e+00> : vector<256xf32>
    %51 = vector.multi_reduction <add>, %50, %cst_23 [0] : vector<64x256xf32> to vector<256xf32>
    %52 = vector.shape_cast %51 : vector<256xf32> to vector<1x256xf32>
    %53 = arith.mulf %50, %50 : vector<64x256xf32>
    %cst_24 = arith.constant dense<0.000000e+00> : vector<256xf32>
    %54 = vector.multi_reduction <add>, %53, %cst_24 [0] : vector<64x256xf32> to vector<256xf32>
    %55 = vector.shape_cast %54 : vector<256xf32> to vector<1x256xf32>
    %56 = tpu.concatenate %52, %55 in 0 : vector<1x256xf32>, vector<1x256xf32> -> vector<2x256xf32>
    %c0_25 = arith.constant 0 : index
    %c0_26 = arith.constant 0 : index
    %57 = vector.load %arg4[%c0_25, %c0_26] : memref<256x8xf32, #tpu.memory_space<vmem>>, vector<256x8xf32>
    %cst_27 = arith.constant dense<0.000000e+00> : vector<2x8xf32>
    %58 = tpu.matmul %56, %57, %cst_27 {dimension_numbers = #tpu.dot_dimension_numbers<[1], [0], [0], [1], [0, 0, 1, 1], [], []>} : vector<2x256xf32>, vector<256x8xf32>, vector<2x8xf32> -> vector<2x8xf32>
    %cst_28 = arith.constant 4.8828125E-4 : f32
    %59 = vector.broadcast %cst_28 : f32 to vector<2x8xf32>
    %60 = arith.mulf %58, %59 : vector<2x8xf32>
    %61 = vector.extract_strided_slice %60 {offsets = [0, 0], sizes = [1, 8], strides = [1, 1]} : vector<2x8xf32> to vector<1x8xf32>
    %62 = vector.extract_strided_slice %60 {offsets = [1, 0], sizes = [1, 8], strides = [1, 1]} : vector<2x8xf32> to vector<1x8xf32>
    %63 = arith.mulf %61, %61 : vector<1x8xf32>
    %64 = arith.subf %62, %63 : vector<1x8xf32>
    %c0_29 = arith.constant 0 : index
    %c0_30 = arith.constant 0 : index
    %65 = vector.load %arg6[%c0_29, %c0_30] : memref<1x8xf32, #tpu.memory_space<vmem>>, vector<1x8xf32>
    %cst_31 = arith.constant 9.99999974E-6 : f32
    %66 = vector.broadcast %cst_31 : f32 to vector<1x8xf32>
    %67 = arith.addf %64, %66 : vector<1x8xf32>
    %68 = math.rsqrt %67 : vector<1x8xf32>
    %69 = arith.mulf %65, %68 : vector<1x8xf32>
    %c0_32 = arith.constant 0 : index
    %c0_33 = arith.constant 0 : index
    %70 = vector.load %arg7[%c0_32, %c0_33] : memref<1x8xf32, #tpu.memory_space<vmem>>, vector<1x8xf32>
    %71 = arith.mulf %61, %69 : vector<1x8xf32>
    %72 = arith.subf %70, %71 : vector<1x8xf32>
    %73 = tpu.concatenate %69, %72 in 0 : vector<1x8xf32>, vector<1x8xf32> -> vector<2x8xf32>
    %c0_34 = arith.constant 0 : index
    %c0_35 = arith.constant 0 : index
    %74 = vector.load %arg3[%c0_34, %c0_35] : memref<8x256xf32, #tpu.memory_space<vmem>>, vector<8x256xf32>
    %cst_36 = arith.constant dense<0.000000e+00> : vector<2x256xf32>
    %75 = tpu.matmul %73, %74, %cst_36 {dimension_numbers = #tpu.dot_dimension_numbers<[1], [0], [0], [1], [0, 0, 1, 1], [], []>} : vector<2x8xf32>, vector<8x256xf32>, vector<2x256xf32> -> vector<2x256xf32>
    %76 = vector.extract_strided_slice %75 {offsets = [0, 0], sizes = [1, 256], strides = [1, 1]} : vector<2x256xf32> to vector<1x256xf32>
    %77 = vector.broadcast %76 : vector<1x256xf32> to vector<64x256xf32>
    %78 = arith.mulf %50, %77 : vector<64x256xf32>
    %79 = vector.extract_strided_slice %75 {offsets = [1, 0], sizes = [1, 256], strides = [1, 1]} : vector<2x256xf32> to vector<1x256xf32>
    %80 = vector.broadcast %79 : vector<1x256xf32> to vector<64x256xf32>
    %81 = arith.addf %78, %80 : vector<64x256xf32>
    %cst_37 = arith.constant 0.000000e+00 : f32
    %82 = vector.broadcast %cst_37 : f32 to vector<64x256xf32>
    %83 = arith.maximumf %81, %82 : vector<64x256xf32>
    %84 = arith.truncf %83 : vector<64x256xf32> to vector<64x256xbf16>
    %c1_i32_38 = arith.constant 1 : i32
    %85 = tpu.dynamic_rotate %83 by %c1_i32_38 dim 0 : vector<64x256xf32>, i32 -> vector<64x256xf32>
    %cst_39 = arith.constant 0.000000e+00 : f32
    %86 = vector.shape_cast %25 : vector<64x1xi1> to vector<64x1xi1>
    %87 = vector.broadcast %86 : vector<64x1xi1> to vector<64x256xi1>
    %88 = vector.broadcast %cst_39 : f32 to vector<64x256xf32>
    %89 = arith.select %87, %85, %88 : vector<64x256xi1>, vector<64x256xf32>
    %90 = arith.truncf %89 : vector<64x256xf32> to vector<64x256xbf16>
    %c63_i32_40 = arith.constant 63 : i32
    %91 = tpu.dynamic_rotate %83 by %c63_i32_40 dim 0 : vector<64x256xf32>, i32 -> vector<64x256xf32>
    %cst_41 = arith.constant 0.000000e+00 : f32
    %92 = vector.shape_cast %27 : vector<64x1xi1> to vector<64x1xi1>
    %93 = vector.broadcast %92 : vector<64x1xi1> to vector<64x256xi1>
    %94 = vector.broadcast %cst_41 : f32 to vector<64x256xf32>
    %95 = arith.select %93, %91, %94 : vector<64x256xi1>, vector<64x256xf32>
    %96 = arith.truncf %95 : vector<64x256xf32> to vector<64x256xbf16>
    %c0_42 = arith.constant 0 : index
    %c0_43 = arith.constant 0 : index
    %c0_44 = arith.constant 0 : index
    %97 = vector.load %arg8[%c0_42, %c0_43, %c0_44] : memref<3x256x256xbf16, #tpu.memory_space<vmem>>, vector<1x256x256xbf16>
    %98 = vector.shape_cast %97 : vector<1x256x256xbf16> to vector<256x256xbf16>
    %cst_45 = arith.constant dense<0.000000e+00> : vector<64x256xf32>
    %99 = tpu.matmul %90, %98, %cst_45 {dimension_numbers = #tpu.dot_dimension_numbers<[1], [0], [0], [1], [0, 0, 1, 1], [], []>} : vector<64x256xbf16>, vector<256x256xbf16>, vector<64x256xf32> -> vector<64x256xf32>
    %c1_46 = arith.constant 1 : index
    %c0_47 = arith.constant 0 : index
    %c0_48 = arith.constant 0 : index
    %100 = vector.load %arg8[%c1_46, %c0_47, %c0_48] : memref<3x256x256xbf16, #tpu.memory_space<vmem>>, vector<1x256x256xbf16>
    %101 = vector.shape_cast %100 : vector<1x256x256xbf16> to vector<256x256xbf16>
    %cst_49 = arith.constant dense<0.000000e+00> : vector<64x256xf32>
    %102 = tpu.matmul %84, %101, %cst_49 {dimension_numbers = #tpu.dot_dimension_numbers<[1], [0], [0], [1], [0, 0, 1, 1], [], []>} : vector<64x256xbf16>, vector<256x256xbf16>, vector<64x256xf32> -> vector<64x256xf32>
    %103 = arith.addf %99, %102 : vector<64x256xf32>
    %c2_50 = arith.constant 2 : index
    %c0_51 = arith.constant 0 : index
    %c0_52 = arith.constant 0 : index
    %104 = vector.load %arg8[%c2_50, %c0_51, %c0_52] : memref<3x256x256xbf16, #tpu.memory_space<vmem>>, vector<1x256x256xbf16>
    %105 = vector.shape_cast %104 : vector<1x256x256xbf16> to vector<256x256xbf16>
    %cst_53 = arith.constant dense<0.000000e+00> : vector<64x256xf32>
    %106 = tpu.matmul %96, %105, %cst_53 {dimension_numbers = #tpu.dot_dimension_numbers<[1], [0], [0], [1], [0, 0, 1, 1], [], []>} : vector<64x256xbf16>, vector<256x256xbf16>, vector<64x256xf32> -> vector<64x256xf32>
    %107 = arith.addf %103, %106 : vector<64x256xf32>
    %cst_54 = arith.constant dense<0.000000e+00> : vector<256xf32>
    %108 = vector.multi_reduction <add>, %107, %cst_54 [0] : vector<64x256xf32> to vector<256xf32>
    %109 = vector.shape_cast %108 : vector<256xf32> to vector<1x256xf32>
    %110 = arith.mulf %107, %107 : vector<64x256xf32>
    %cst_55 = arith.constant dense<0.000000e+00> : vector<256xf32>
    %111 = vector.multi_reduction <add>, %110, %cst_55 [0] : vector<64x256xf32> to vector<256xf32>
    %112 = vector.shape_cast %111 : vector<256xf32> to vector<1x256xf32>
    %113 = tpu.concatenate %109, %112 in 0 : vector<1x256xf32>, vector<1x256xf32> -> vector<2x256xf32>
    %c0_56 = arith.constant 0 : index
    %c0_57 = arith.constant 0 : index
    %114 = vector.load %arg4[%c0_56, %c0_57] : memref<256x8xf32, #tpu.memory_space<vmem>>, vector<256x8xf32>
    %cst_58 = arith.constant dense<0.000000e+00> : vector<2x8xf32>
    %115 = tpu.matmul %113, %114, %cst_58 {dimension_numbers = #tpu.dot_dimension_numbers<[1], [0], [0], [1], [0, 0, 1, 1], [], []>} : vector<2x256xf32>, vector<256x8xf32>, vector<2x8xf32> -> vector<2x8xf32>
    %cst_59 = arith.constant 4.8828125E-4 : f32
    %116 = vector.broadcast %cst_59 : f32 to vector<2x8xf32>
    %117 = arith.mulf %115, %116 : vector<2x8xf32>
    %118 = vector.extract_strided_slice %117 {offsets = [0, 0], sizes = [1, 8], strides = [1, 1]} : vector<2x8xf32> to vector<1x8xf32>
    %119 = vector.extract_strided_slice %117 {offsets = [1, 0], sizes = [1, 8], strides = [1, 1]} : vector<2x8xf32> to vector<1x8xf32>
    %120 = arith.mulf %118, %118 : vector<1x8xf32>
    %121 = arith.subf %119, %120 : vector<1x8xf32>
    %c0_60 = arith.constant 0 : index
    %c0_61 = arith.constant 0 : index
    %122 = vector.load %arg9[%c0_60, %c0_61] : memref<1x8xf32, #tpu.memory_space<vmem>>, vector<1x8xf32>
    %cst_62 = arith.constant 9.99999974E-6 : f32
    %123 = vector.broadcast %cst_62 : f32 to vector<1x8xf32>
    %124 = arith.addf %121, %123 : vector<1x8xf32>
    %125 = math.rsqrt %124 : vector<1x8xf32>
    %126 = arith.mulf %122, %125 : vector<1x8xf32>
    %c0_63 = arith.constant 0 : index
    %c0_64 = arith.constant 0 : index
    %127 = vector.load %arg10[%c0_63, %c0_64] : memref<1x8xf32, #tpu.memory_space<vmem>>, vector<1x8xf32>
    %128 = arith.mulf %118, %126 : vector<1x8xf32>
    %129 = arith.subf %127, %128 : vector<1x8xf32>
    %130 = tpu.concatenate %126, %129 in 0 : vector<1x8xf32>, vector<1x8xf32> -> vector<2x8xf32>
    %c0_65 = arith.constant 0 : index
    %c0_66 = arith.constant 0 : index
    %131 = vector.load %arg3[%c0_65, %c0_66] : memref<8x256xf32, #tpu.memory_space<vmem>>, vector<8x256xf32>
    %cst_67 = arith.constant dense<0.000000e+00> : vector<2x256xf32>
    %132 = tpu.matmul %130, %131, %cst_67 {dimension_numbers = #tpu.dot_dimension_numbers<[1], [0], [0], [1], [0, 0, 1, 1], [], []>} : vector<2x8xf32>, vector<8x256xf32>, vector<2x256xf32> -> vector<2x256xf32>
    %133 = vector.extract_strided_slice %132 {offsets = [0, 0], sizes = [1, 256], strides = [1, 1]} : vector<2x256xf32> to vector<1x256xf32>
    %134 = vector.broadcast %133 : vector<1x256xf32> to vector<64x256xf32>
    %135 = arith.mulf %107, %134 : vector<64x256xf32>
    %136 = vector.extract_strided_slice %132 {offsets = [1, 0], sizes = [1, 256], strides = [1, 1]} : vector<2x256xf32> to vector<1x256xf32>
    %137 = vector.broadcast %136 : vector<1x256xf32> to vector<64x256xf32>
    %138 = arith.addf %135, %137 : vector<64x256xf32>
    %c0_68 = arith.constant 0 : index
    %c0_69 = arith.constant 0 : index
    %139 = vector.load %arg11[%c0_68, %c0_69] : memref<128x256xbf16, #tpu.memory_space<vmem>>, vector<128x256xbf16>
    %cst_70 = arith.constant dense<0.000000e+00> : vector<64x256xf32>
    %140 = tpu.matmul %6, %139, %cst_70 {dimension_numbers = #tpu.dot_dimension_numbers<[1], [0], [0], [1], [0, 0, 1, 1], [], []>} : vector<64x128xbf16>, vector<128x256xbf16>, vector<64x256xf32> -> vector<64x256xf32>
    %cst_71 = arith.constant dense<0.000000e+00> : vector<256xf32>
    %141 = vector.multi_reduction <add>, %140, %cst_71 [0] : vector<64x256xf32> to vector<256xf32>
    %142 = vector.shape_cast %141 : vector<256xf32> to vector<1x256xf32>
    %143 = arith.mulf %140, %140 : vector<64x256xf32>
    %cst_72 = arith.constant dense<0.000000e+00> : vector<256xf32>
    %144 = vector.multi_reduction <add>, %143, %cst_72 [0] : vector<64x256xf32> to vector<256xf32>
    %145 = vector.shape_cast %144 : vector<256xf32> to vector<1x256xf32>
    %146 = tpu.concatenate %142, %145 in 0 : vector<1x256xf32>, vector<1x256xf32> -> vector<2x256xf32>
    %c0_73 = arith.constant 0 : index
    %c0_74 = arith.constant 0 : index
    %147 = vector.load %arg4[%c0_73, %c0_74] : memref<256x8xf32, #tpu.memory_space<vmem>>, vector<256x8xf32>
    %cst_75 = arith.constant dense<0.000000e+00> : vector<2x8xf32>
    %148 = tpu.matmul %146, %147, %cst_75 {dimension_numbers = #tpu.dot_dimension_numbers<[1], [0], [0], [1], [0, 0, 1, 1], [], []>} : vector<2x256xf32>, vector<256x8xf32>, vector<2x8xf32> -> vector<2x8xf32>
    %cst_76 = arith.constant 4.8828125E-4 : f32
    %149 = vector.broadcast %cst_76 : f32 to vector<2x8xf32>
    %150 = arith.mulf %148, %149 : vector<2x8xf32>
    %151 = vector.extract_strided_slice %150 {offsets = [0, 0], sizes = [1, 8], strides = [1, 1]} : vector<2x8xf32> to vector<1x8xf32>
    %152 = vector.extract_strided_slice %150 {offsets = [1, 0], sizes = [1, 8], strides = [1, 1]} : vector<2x8xf32> to vector<1x8xf32>
    %153 = arith.mulf %151, %151 : vector<1x8xf32>
    %154 = arith.subf %152, %153 : vector<1x8xf32>
    %c0_77 = arith.constant 0 : index
    %c0_78 = arith.constant 0 : index
    %155 = vector.load %arg12[%c0_77, %c0_78] : memref<1x8xf32, #tpu.memory_space<vmem>>, vector<1x8xf32>
    %cst_79 = arith.constant 9.99999974E-6 : f32
    %156 = vector.broadcast %cst_79 : f32 to vector<1x8xf32>
    %157 = arith.addf %154, %156 : vector<1x8xf32>
    %158 = math.rsqrt %157 : vector<1x8xf32>
    %159 = arith.mulf %155, %158 : vector<1x8xf32>
    %c0_80 = arith.constant 0 : index
    %c0_81 = arith.constant 0 : index
    %160 = vector.load %arg13[%c0_80, %c0_81] : memref<1x8xf32, #tpu.memory_space<vmem>>, vector<1x8xf32>
    %161 = arith.mulf %151, %159 : vector<1x8xf32>
    %162 = arith.subf %160, %161 : vector<1x8xf32>
    %163 = tpu.concatenate %159, %162 in 0 : vector<1x8xf32>, vector<1x8xf32> -> vector<2x8xf32>
    %c0_82 = arith.constant 0 : index
    %c0_83 = arith.constant 0 : index
    %164 = vector.load %arg3[%c0_82, %c0_83] : memref<8x256xf32, #tpu.memory_space<vmem>>, vector<8x256xf32>
    %cst_84 = arith.constant dense<0.000000e+00> : vector<2x256xf32>
    %165 = tpu.matmul %163, %164, %cst_84 {dimension_numbers = #tpu.dot_dimension_numbers<[1], [0], [0], [1], [0, 0, 1, 1], [], []>} : vector<2x8xf32>, vector<8x256xf32>, vector<2x256xf32> -> vector<2x256xf32>
    %166 = vector.extract_strided_slice %165 {offsets = [0, 0], sizes = [1, 256], strides = [1, 1]} : vector<2x256xf32> to vector<1x256xf32>
    %167 = vector.broadcast %166 : vector<1x256xf32> to vector<64x256xf32>
    %168 = arith.mulf %140, %167 : vector<64x256xf32>
    %169 = vector.extract_strided_slice %165 {offsets = [1, 0], sizes = [1, 256], strides = [1, 1]} : vector<2x256xf32> to vector<1x256xf32>
    %170 = vector.broadcast %169 : vector<1x256xf32> to vector<64x256xf32>
    %171 = arith.addf %168, %170 : vector<64x256xf32>
    %172 = arith.addf %138, %171 : vector<64x256xf32>
    %cst_85 = arith.constant 0.000000e+00 : f32
    %173 = vector.broadcast %cst_85 : f32 to vector<64x256xf32>
    %174 = arith.maximumf %172, %173 : vector<64x256xf32>
    %c0_86 = arith.constant 0 : index
    %c0_87 = arith.constant 0 : index
    %175 = vector.load %arg14[%c0_86, %c0_87] : memref<64x256xf32, #tpu.memory_space<vmem>>, vector<64x256xf32>
    tpu.vector_store %arg14[%c0_86, %c0_87], %174 {strides = array<i32>} : memref<64x256xf32, #tpu.memory_space<vmem>>, vector<64x256xf32>,
    return
  }
}

</mosaic_0001>

<bundles_post_ra>
// kernel: tpu_custom_call.1
= control target key start
LH: loop header
LB: loop body
LE: loop exit
PB: predicated region body
PF: predicated region fallthrough
CT: control target
= control target key end

     0   :  { %19 = vsyncpa [#allocation3], 0  ;;  %s5296_s0 = inlined_call_operand.vmem [shape: bf16[32,64], index: 0, kind: input, shape index: {}]   ;;  %s5297_s1 = inlined_call_operand.vmem [shape: bf16[64,128], index: 1, kind: input, shape index: {}]   ;;  %s5298_s2 = inlined_call_operand.vmem [shape: bf16[64,32], index: 2, kind: input, shape index: {}]   ;;  %s5299_s3 = inlined_call_operand.vmem [shape: f32[8,256], index: 3, kind: input, shape index: {}]   ;;  %s5300_s4 = inlined_call_operand.vmem [shape: f32[256,8], index: 4, kind: input, shape index: {}]   ;;  %s5301_s5 = inlined_call_operand.hbm [shape: bf16[3,128,256], index: 5, kind: input, shape index: {}]   ;;  %s5302_s6 = inlined_call_operand.vmem [shape: f32[1,8], index: 6, kind: input, shape index: {}]   ;;  %s5303_s7 = inlined_call_operand.vmem [shape: f32[1,8], index: 7, kind: input, shape index: {}]   ;;  %s5304_s8 = inlined_call_operand.hbm [shape: bf16[3,256,256], index: 8, kind: input, shape index: {}]   ;;  %s5305_s9 = inlined_call_operand.vmem [shape: f32[1,8], index: 9, kind: input, shape index: {}]   ;;  %s5306_s10 = inlined_call_operand.vmem [shape: f32[1,8], index: 10, kind: input, shape index: {}]   ;;  %s5307_s11 = inlined_call_operand.vmem [shape: bf16[128,256], index: 11, kind: input, shape index: {}]   ;;  %s5308_s12 = inlined_call_operand.vmem [shape: f32[1,8], index: 12, kind: input, shape index: {}]   ;;  %s5309_s13 = inlined_call_operand.vmem [shape: f32[1,8], index: 13, kind: input, shape index: {}]   ;;  %s5310_s14 = inlined_call_operand.hbm [shape: f32[64,256], index: 14, kind: output, shape index: {}]  }
   0x1   :  { %20 = vsyncpa [#allocation6], 0 }
   0x2   :  { %21 = vsyncpa [#allocation4], 0  ;;  %s4001_s29 = smov [#allocation2]   ;;  %s3929_s17 = scalar_lea.hbm %s5301_s5, 6144 }
   0x3   :  { %s37_s30 = sshll.u32 %s4001_s29, 4  ;;  %p3930_p0 = scmp.ne.s32.totalorder %s5301_s5, %s3929_s17  ;;  %s38_s30 = int_to_ptr.vmem [resolvable:$true] %s37_s30 }
   0x4   :  { %p3933_p1 = scmp.lt.u32.totalorder %s3929_s17, %s5301_s5 }
   0x6   :  { %p3935_p2 = pnand %p3933_p1, %p3930_p0 }
   0x8   :  { %3938 = shalt.err (!%p3935_p2)
}
   0x9   :  { %s3939_s22 = scalar_lea.vmem %s38_s30, 6144  ;;  %p3944_p4 = scmp.lt.s32.totalorder %s38_s30, %s38_s30 }
   0xa   :  { %p3940_p3 = scmp.ne.s32.totalorder %s38_s30, %s3939_s22  ;;  %p3945_p5 = scmp.lt.s32.totalorder %s3939_s22, %s3939_s22 }
   0xc   :  { %p3946_p6 = por %p3945_p5, %p3944_p4 }
   0xe   :  { %p3947_p7 = pnand %p3946_p6, %p3940_p3 }
  0x10   :  { %3950 = shalt.err (!%p3947_p7)
}
  0x11   :  { %s4002_s23 = smov 128   ;;  %s4003_s24 = smov 8  }
  0x12   :  { %43 = dma.hbm_to_vmem [thread:$0]  %s5301_s5, 6144, %s38_s30, [#allocation3], %s4002_s23, %s4002_s23, %s4003_s24  }
  0x13   :  { %s4004_s27 = smov [#allocation5]   ;;  %s3951_s16 = scalar_lea.hbm %s5304_s8, 12288 }
  0x14   :  { %s53_s28 = sshll.u32 %s4004_s27, 4  ;;  %p3952_p8 = scmp.ne.s32.totalorder %s5304_s8, %s3951_s16  ;;  %s54_s28 = int_to_ptr.vmem [resolvable:$true] %s53_s28 }
  0x15   :  { %p3955_p9 = scmp.lt.u32.totalorder %s3951_s16, %s5304_s8 }
  0x17   :  { %p3957_p10 = pnand %p3955_p9, %p3952_p8 }
  0x19   :  { %3960 = shalt.err (!%p3957_p10)
}
  0x1a   :  { %s3961_s21 = scalar_lea.vmem %s54_s28, 12288  ;;  %p3966_p12 = scmp.lt.s32.totalorder %s54_s28, %s54_s28 }
  0x1b   :  { %p3962_p11 = scmp.ne.s32.totalorder %s54_s28, %s3961_s21  ;;  %p3967_p13 = scmp.lt.s32.totalorder %s3961_s21, %s3961_s21 }
  0x1d   :  { %p3968_p0 = por %p3967_p13, %p3966_p12 }
  0x1f   :  { %p3969_p1 = pnand %p3968_p0, %p3962_p11 }
  0x21   :  { %3972 = shalt.err (!%p3969_p1)
}
  0x22   :  { %59 = dma.hbm_to_vmem [thread:$0]  %s5304_s8, 12288, %s54_s28, [#allocation6], %s4002_s23, %s4002_s23, %s4003_s24  }
  0x23   :  { %3995 = dma.done.wait [#allocation3], 6144  }
  0x24   :  { %3996 = vsyncadd [#allocation3], 4294961152 }
  0x25   :  { %3997 = dma.done.wait [#allocation6], 12288  }
  0x26   :  { %3998 = vsyncadd [#allocation6], 4294955008  ;;  %v3671_v0 = vld [vmem:[%s5297_s1] sm:$0xff]   ;;  %v3672_v1 = vld [vmem:[%s5297_s1 + $0x8] sm:$0xff]   ;;  %vm123_vm0 = vcmask 523264   ;;  %vm209_vm1 = vcmask 261120   ;;  %v291_v34 = vlaneseq }
  0x27   :  { %3476 = vmatprep.subr.bf16.mxu0 %v3671_v0  ;;  %v3673_v2 = vld [vmem:[%s5297_s1 + $0x10] sm:$0xff]   ;;  %v3675_v3 = vld [vmem:[%s5296_s0] sm:$0xff]   ;;  %v3674_v4 = vld [vmem:[%s5297_s1 + $0x18] sm:$0xff]   ;;  %v5311_v33 = vmov 0   ;;  %vm4006_vm5 = vmmov 1   ;;  %vm1095_vm13 = vcmask 1040384  }
  0x28   :  { %3477 = vmatpush3.bf16.msra.mxu0 %v3671_v0  ;;  %3484 = vmatprep.mubr.msk.bf16.mxu0 %vm123_vm0, %v3675_v3  ;;  %v3676_v5 = vld [vmem:[%s5296_s0 + $0x8] sm:$0xff]   ;;  %v3677_v6 = vld [vmem:[%s5298_s2] sm:$0xff]   ;;  %v3679_v15 = vld [vmem:[%s5298_s2 + $0x10] sm:$0xff]   ;;  %v4146_v35 = vshrl.u32 %v291_v34, 7  ;;  %vm1239_vm14 = vcmask 64512  }
  0x29   :  { %3478 = vmatprep.subr.bf16.mxu0 %v3672_v1  ;;  %3492 = vmatprep.mubr.msk.bf16.mxu1 %vm209_vm1, %v3677_v6  ;;  %v3683_v13 = vld [vmem:[#allocation2 + $0x84] ss:$8 sps:$4 sm:$0xff]   ;;  %v3681_v16 = vld [vmem:[#allocation2 + $0x80] ss:$8 sps:$4 sm:$0xff]   ;;  %v3686_v17 = vld [vmem:[#allocation2 + $0x94] ss:$8 sps:$4 sm:$0xff]  }
  0x2a   :  { %v3678_v14 = vld [vmem:[%s5298_s2 + $0x8] sm:$0xff]   ;;  %v3684_v18 = vld [vmem:[#allocation2 + $0x90] ss:$8 sps:$4 sm:$0xff]   ;;  %v3692_v22 = vld [vmem:[#allocation2 + $0xb4] ss:$8 sps:$4 sm:$0xff]   ;;  %vm465_vm2 = vcmp.lt.s32.totalorder %v4146_v35, 7 }
  0x2b   :  { %v3689_v19 = vld [vmem:[#allocation2 + $0xa4] ss:$8 sps:$4 sm:$0xff]   ;;  %v3680_v20 = vld [vmem:[%s5298_s2 + $0x18] sm:$0xff]   ;;  %v3687_v21 = vld [vmem:[#allocation2 + $0xa0] ss:$8 sps:$4 sm:$0xff]   ;;  %vm420_vm3 = vcmp.lt.s32.totalorder %v4146_v35, 1 }
  0x2c   :  { %3479 = vmatpush3.bf16.msra.mxu0 %v3672_v1  ;;  %v3690_v23 = vld [vmem:[#allocation2 + $0xb0] ss:$8 sps:$4 sm:$0xff]   ;;  %v3695_v24 = vld [vmem:[#allocation2 + $0xc4] ss:$8 sps:$4 sm:$0xff]   ;;  %v3693_v25 = vld [vmem:[#allocation2 + $0xc0] ss:$8 sps:$4 sm:$0xff]  }
  0x2d   :  { %3480 = vmatprep.subr.bf16.mxu0 %v3673_v2  ;;  %v3698_v26 = vld [vmem:[#allocation2 + $0xd4] ss:$8 sps:$4 sm:$0xff]   ;;  %v3696_v27 = vld [vmem:[#allocation2 + $0xd0] ss:$8 sps:$4 sm:$0xff]   ;;  %v3701_v28 = vld [vmem:[#allocation2 + $0xe4] ss:$8 sps:$4 sm:$0xff]  }
  0x2e   :  { %v3699_v29 = vld [vmem:[#allocation2 + $0xe0] ss:$8 sps:$4 sm:$0xff]   ;;  %v3704_v30 = vld [vmem:[#allocation2 + $0xf4] ss:$8 sps:$4 sm:$0xff]   ;;  %v3702_v31 = vld [vmem:[#allocation2 + $0xf0] ss:$8 sps:$4 sm:$0xff]  }
  0x2f   :  { %v3707_v32 = vld [vmem:[#allocation2 + $0x4] ss:$8 sps:$4 sm:$0xff]   ;;  %v3705_v46 = vld [vmem:[#allocation2] ss:$8 sps:$4 sm:$0xff]   ;;  %v3710_v51 = vld [vmem:[#allocation2 + $0x14] ss:$8 sps:$4 sm:$0xff]  }
  0x30   :  { %3481 = vmatpush3.bf16.msra.mxu0 %v3673_v2  ;;  %v3708_v59 = vld [vmem:[#allocation2 + $0x10] ss:$8 sps:$4 sm:$0xff]   ;;  %v3713_v62 = vld [vmem:[#allocation2 + $0x24] ss:$8 sps:$4 sm:$0xff]   ;;  %v3722_v34 = vld [vmem:[#allocation2 + $0x54] ss:$8 sps:$4 sm:$0xff]  }
  0x31   :  { %3482 = vmatprep.subr.bf16.mxu0 %v3674_v4 }
  0x34   :  { %3483 = vmatpush3.bf16.msra.mxu0 %v3674_v4 }
  0x37   :  { %3485 = vmatmul.mubr.msk.bf16.vlgmr.msra.gmra.mrb[0].mxu0 %vm123_vm0, %v3676_v5 }
 0x10a   :  { %v3486_v7 = vpop.f32.mrb[0].mxu0 }
 0x10b   :  { %v164_v8 = vpop.f32.mrb[1].mxu0 }
 0x10c   :  { %v3487_v9 = vpop.f32.mrb[2].mxu0 }
 0x10d   :  { %v188_v10 = vpack.c.bf16 %v3487_v9, %v3486_v7  ;;  %v167_v11 = vpop.f32.mrb[3].mxu0  ;;  %v3711_v9 = vld [vmem:[#allocation2 + $0x20] ss:$8 sps:$4 sm:$0xff]  }
 0x10e   :  { %v187_v12 = vpack.c.bf16 %v167_v11, %v164_v8 }
 0x110   :  { %3488 = vmatprep.subr.bf16.mxu1 %v187_v12 }
 0x111   :  { %3489 = vmatpush3.bf16.msra.mxu1 %v187_v12 }
 0x112   :  { %3490 = vmatprep.subr.bf16.mxu1 %v188_v10 }
 0x115   :  { %3491 = vmatpush3.bf16.msra.mxu1 %v188_v10 }
 0x116   :  { %615 = vmatprep.subr.bf16.mxu1 %v3683_v13 }
 0x118   :  { %3493 = vmatmul.mubr.msk.bf16.vlgmr.msra.gmra.mrb[0].mxu1 %vm209_vm1, %v3678_v14  ;;  %v3716_v14 = vld [vmem:[#allocation2 + $0x34] ss:$8 sps:$4 sm:$0xff]  }
 0x119   :  { %3496 = vmatprep.mubr.msk.bf16.mxu1 %vm209_vm1, %v3679_v15  ;;  %616 = vmatpush1.bf16.msra.mxu1 %v3681_v16 }
 0x11a   :  { %617 = vmatprep.subr.bf16.mxu1 %v3686_v17 }
 0x11d   :  { %618 = vmatpush1.bf16.msra.mxu1 %v3684_v18 }
 0x11e   :  { %619 = vmatprep.subr.bf16.mxu1 %v3689_v19 }
 0x120   :  { %3497 = vmatmul.mubr.msk.bf16.gmra.mrb[4].mxu1 %vm209_vm1, %v3680_v20 }
 0x121   :  { %620 = vmatpush1.bf16.msra.mxu1 %v3687_v21  ;;  %647 = vmatprep.mubr.bf16.mxu1 %v5311_v33 }
 0x122   :  { %621 = vmatprep.subr.bf16.mxu1 %v3692_v22 }
 0x125   :  { %622 = vmatpush1.bf16.msra.mxu1 %v3690_v23  ;;  %v3714_v23 = vld [vmem:[#allocation2 + $0x30] ss:$8 sps:$4 sm:$0xff]  }
 0x126   :  { %623 = vmatprep.subr.bf16.mxu1 %v3695_v24 }
 0x129   :  { %624 = vmatpush1.bf16.msra.mxu1 %v3693_v25 }
 0x12a   :  { %625 = vmatprep.subr.bf16.mxu1 %v3698_v26 }
 0x12d   :  { %626 = vmatpush1.bf16.msra.mxu1 %v3696_v27  ;;  %v3719_v27 = vld [vmem:[#allocation2 + $0x44] ss:$8 sps:$4 sm:$0xff]  }
 0x12e   :  { %627 = vmatprep.subr.bf16.mxu1 %v3701_v28 }
 0x131   :  { %628 = vmatpush1.bf16.msra.mxu1 %v3699_v29 }
 0x132   :  { %629 = vmatprep.subr.bf16.mxu1 %v3704_v30 }
 0x135   :  { %630 = vmatpush1.bf16.msra.mxu1 %v3702_v31 }
 0x136   :  { %768 = vmatprep.subr.bf16.mxu1 %v3707_v32  ;;  %v3717_v32 = vld [vmem:[#allocation2 + $0x40] ss:$8 sps:$4 sm:$0xff]  }
 0x1eb   :  { %v3494_v36 = vpop.f32.mrb[0].mxu1 }
 0x1ec   :  { %v256_v37 = vpop.f32.mrb[1].mxu1  ;;  %v414_v38 = vrot.slane %v3494_v36, 7  ;;  %v459_v39 = vrot.slane %v3494_v36, 1 }
 0x1ed   :  { %v3495_v40 = vpop.f32.mrb[2].mxu1  ;;  %v412_v41 = vrot.slane %v256_v37, 7  ;;  %v457_v47 = vrot.slane %v256_v37, 1 }
 0x1ee   :  { %v4150_v42 = vpack.c.bf16 %v3495_v40, %v3494_v36  ;;  %v415_v43 = vrot.slane %v3495_v40, 7  ;;  %v460_v44 = vrot.slane %v3495_v40, 1  ;;  %v259_v45 = vpop.f32.mrb[3].mxu1  ;;  %v3720_v36 = vld [vmem:[#allocation2 + $0x50] ss:$8 sps:$4 sm:$0xff]   ;;  %v304_v40 = vand.u32 31, %v4146_v35 }
 0x1ef   :  { %v4152_v48 = vpack.c.bf16 %v259_v45, %v256_v37  ;;  %v413_v49 = vrot.slane %v259_v45, 7  ;;  %v458_v50 = vrot.slane %v259_v45, 1  ;;  %v3725_v37 = vld [vmem:[#allocation2 + $0x64] ss:$8 sps:$4 sm:$0xff]  }
 0x1f0   :  { %5328 = vst [vmem:[#allocation11_spill] sm:$0xff] %v4150_v42  ;;  %v4156_v52 = vsel %vm465_vm2, %v459_v39, %v460_v44  ;;  %v4160_v53 = vsel %vm420_vm3, %v414_v38, %v415_v43  ;;  %vm396_vm4 = vcmp.ne.s32.totalorder %v304_v40, 0  ;;  %v1124_v40 = vld [vmem:[%s5300_s4 + $0xd0] sm:$0xff] }
 0x1f1   :  { %5329 = vst [vmem:[#allocation12_spill] sm:$0xff] %v4152_v48  ;;  %v4164_v54 = vsel %vm420_vm3, %v412_v41, %v413_v49  ;;  %v4168_v55 = vsel %vm465_vm2, %v458_v50, %v459_v39  ;;  %v4172_v56 = vsel %vm465_vm2, %v457_v47, %v458_v50  ;;  %648 = vmatmul.mubr.bf16.vlgmr.msra.gmra.mrb[8].mxu1 %v4152_v48  ;;  %v3728_v39 = vld [vmem:[#allocation2 + $0x74] ss:$8 sps:$4 sm:$0xff]   ;;  %vm4245_vm6 = vmpackc.low %vm4006_vm5, %vm396_vm4  ;;  %v296_v50 = vadd.s32 32, %v4146_v35 }
 0x1f2   :  { %v4177_v57 = vsel %vm420_vm3, %v413_v49, %v414_v38  ;;  %v498_v58 = vpack.c.bf16 %v4168_v55, %v4172_v56  ;;  %769 = vmatpush1.bf16.msra.mxu1 %v3705_v46  ;;  %657 = vmatprep.mubr.bf16.mxu1 %v5311_v33  ;;  %v3723_v38 = vld [vmem:[#allocation2 + $0x60] ss:$8 sps:$4 sm:$0xff]   ;;  %v3734_v46 = vld [vmem:[#allocation2 + $0x114] ss:$8 sps:$4 sm:$0xff]   ;;  %v3737_v49 = vld [vmem:[#allocation2 + $0x124] ss:$8 sps:$4 sm:$0xff]  }
 0x1f3   :  { %v454_v60 = vpack.c.bf16 %v4160_v53, %v4177_v57  ;;  %v3498_v61 = vpop.f32.mrb[4].mxu1  ;;  %770 = vmatprep.subr.bf16.mxu1 %v3710_v51  ;;  %v3735_v51 = vld [vmem:[#allocation2 + $0x120] ss:$8 sps:$4 sm:$0xff]   ;;  %v3744_v53 = vld [vmem:[#allocation2 + $0x150] ss:$8 sps:$4 sm:$0xff]  }
 0x1f4   :  { %v463_v63 = vrot.slane %v3498_v61, 1  ;;  %v272_v0 = vpop.f32.mrb[5].mxu1  ;;  %v418_v1 = vrot.slane %v3498_v61, 7  ;;  %v3749_v57 = vld [vmem:[#allocation2 + $0x164] ss:$8 sps:$4 sm:$0xff]  }
 0x1f5   :  { %v416_v2 = vrot.slane %v272_v0, 7  ;;  %v461_v3 = vrot.slane %v272_v0, 1  ;;  %v3499_v4 = vpop.f32.mrb[6].mxu1 }
 0x1f6   :  { %v4184_v5 = vpack.c.bf16 %v3499_v4, %v3498_v61  ;;  %v419_v6 = vrot.slane %v3499_v4, 7  ;;  %v464_v7 = vrot.slane %v3499_v4, 1  ;;  %771 = vmatpush1.bf16.msra.mxu1 %v3708_v59  ;;  %v275_v8 = vpop.f32.mrb[7].mxu1  ;;  %v332_v59 = vand.u32 31, %v296_v50  ;;  %v3738_v61 = vld [vmem:[#allocation2 + $0x130] ss:$8 sps:$4 sm:$0xff]  }
 0x1f7   :  { %v4188_v10 = vsel %vm420_vm3, %v415_v43, %v416_v2  ;;  %v4192_v11 = vsel %vm465_vm2, %v460_v44, %v461_v3  ;;  %v4194_v12 = vpack.c.bf16 %v275_v8, %v272_v0  ;;  %v417_v13 = vrot.slane %v275_v8, 7  ;;  %772 = vmatprep.subr.bf16.mxu1 %v3713_v62  ;;  %v3731_v43 = vld [vmem:[#allocation2 + $0x104] ss:$8 sps:$4 sm:$0xff]   ;;  %v3729_v44 = vld [vmem:[#allocation2 + $0x100] ss:$8 sps:$4 sm:$0xff]  }
 0x1f8   :  { %5330 = vst [vmem:[#allocation13_spill] sm:$0xff] %v4184_v5  ;;  %v428_v15 = vsel %vm420_vm3, %v419_v6, %v412_v41  ;;  %v4200_v16 = vsel %vm465_vm2, %v463_v63, %v464_v7  ;;  %v4204_v17 = vsel %vm465_vm2, %v464_v7, %v457_v47  ;;  %v462_v18 = vrot.slane %v275_v8, 1  ;;  %v3726_v41 = vld [vmem:[#allocation2 + $0x70] ss:$8 sps:$4 sm:$0xff]   ;;  %v3743_v62 = vld [vmem:[#allocation2 + $0x144] ss:$8 sps:$4 sm:$0xff]  }
 0x1f9   :  { %5331 = vst [vmem:[#allocation14_spill] sm:$0xff] %v4194_v12  ;;  %v3193_v19 = vpack.c.bf16 %v4164_v54, %v428_v15  ;;  %v4209_v20 = vsel %vm420_vm3, %v416_v2, %v417_v13  ;;  %658 = vmatmul.mubr.bf16.gmra.mrb[12].mxu1 %v4150_v42  ;;  %v4214_v21 = vsel %vm420_vm3, %v418_v1, %v419_v6  ;;  %v3732_v47 = vld [vmem:[#allocation2 + $0x110] ss:$8 sps:$4 sm:$0xff]   ;;  %v3740_v54 = vld [vmem:[#allocation2 + $0x134] ss:$8 sps:$4 sm:$0xff]   ;;  %vm400_vm7 = vcmp.ne.s32.totalorder %v332_v59, 0 }
 0x1fa   :  { %v4218_v22 = vsel %vm420_vm3, %v417_v13, %v418_v1  ;;  %773 = vmatpush1.bf16.msra.mxu1 %v3711_v9  ;;  %667 = vmatprep.mubr.bf16.mxu1 %v5311_v33  ;;  %v3196_v24 = vpack.c.bf16 %v4209_v20, %v4188_v10  ;;  %v3215_v26 = vpack.c.bf16 %v4192_v11, %v4156_v52  ;;  %vm4258_vm8 = vmpackc.low %vm4006_vm5, %vm400_vm7  ;;  %v3746_v1 = vld [vmem:[#allocation2 + $0x154] ss:$8 sps:$4 sm:$0xff]   ;;  %v295_v4 = vadd.s32 24, %v4146_v35  ;;  %v1114_v52 = vld [vmem:[%s5300_s4 + $0x80] sm:$0xff] }
 0x1fb   :  { %v456_v25 = vpack.c.bf16 %v4214_v21, %v4218_v22  ;;  %774 = vmatprep.subr.bf16.mxu1 %v3716_v14  ;;  %v4229_v28 = vsel %vm465_vm2, %v462_v18, %v463_v63  ;;  %v4233_v29 = vsel %vm465_vm2, %v461_v3, %v462_v18  ;;  %v3218_v30 = vpack.c.bf16 %v4204_v17, %v4200_v16  ;;  %v3741_v63 = vld [vmem:[#allocation2 + $0x140] ss:$8 sps:$4 sm:$0xff]   ;;  %v3752_v2 = vld [vmem:[#allocation2 + $0x174] ss:$8 sps:$4 sm:$0xff]   ;;  %v3750_v3 = vld [vmem:[#allocation2 + $0x170] ss:$8 sps:$4 sm:$0xff]  }
 0x1fc   :  { %v500_v31 = vpack.c.bf16 %v4229_v28, %v4233_v29  ;;  %v325_v6 = vand.u32 31, %v295_v4  ;;  %v299_v8 = vadd.s32 56, %v4146_v35  ;;  %v1098_v10 = vld [vmem:[%s5300_s4] sm:$0xff]  ;;  %v1099_v11 = vld [vmem:[%s5300_s4 + $0x8] sm:$0xff]  ;;  %v1116_v14 = vld [vmem:[%s5300_s4 + $0x90] sm:$0xff] }
 0x1fd   :  { %v4314_v13 = vpack.c.bf16 %v1099_v11, %v1098_v10  ;;  %v1117_v15 = vld [vmem:[%s5300_s4 + $0x98] sm:$0xff]  ;;  %v1100_v17 = vld [vmem:[%s5300_s4 + $0x10] sm:$0xff]  ;;  %v1118_v20 = vld [vmem:[%s5300_s4 + $0xa0] sm:$0xff] }
 0x1fe   :  { %775 = vmatpush1.bf16.msra.mxu1 %v3714_v23  ;;  %vm407_vm9 = vcmp.ne.s32.totalorder %v325_v6, 31  ;;  %v353_v55 = vand.u32 31, %v299_v8  ;;  %v4324_v16 = vpack.c.bf16 %v1117_v15, %v1116_v14  ;;  %v1101_v18 = vld [vmem:[%s5300_s4 + $0x18] sm:$0xff]  ;;  %v1119_v21 = vld [vmem:[%s5300_s4 + $0xa8] sm:$0xff]  ;;  %v1102_v23 = vld [vmem:[%s5300_s4 + $0x20] sm:$0xff] }
 0x1ff   :  { %776 = vmatprep.subr.bf16.mxu1 %v3719_v27  ;;  %vm4275_vm10 = vmpackc.low %vm407_vm9, %vm4006_vm5  ;;  %v4342_v22 = vpack.c.bf16 %v1119_v21, %v1118_v20  ;;  %v1121_v27 = vld [vmem:[%s5300_s4 + $0xb8] sm:$0xff]  ;;  %v1104_v29 = vld [vmem:[%s5300_s4 + $0x30] sm:$0xff] }
 0x200   :  { %vm411_vm11 = vcmp.ne.s32.totalorder %v353_v55, 31  ;;  %v1127_v50 = vld [vmem:[%s5300_s4 + $0xe8] sm:$0xff]  ;;  %v3870_v0 = vld [vmem:[#allocation5 + $0x270] ss:$8 sps:$4 sm:$0xff]  }
 0x201   :  { %668 = vmatmul.mubr.bf16.gmra.mrb[16].mxu1 %v4194_v12  ;;  %vm4291_vm12 = vmpackc.low %vm411_vm11, %vm4006_vm5  ;;  %v1111_v59 = vld [vmem:[%s5300_s4 + $0x68] sm:$0xff] }
 0x202   :  { %777 = vmatpush1.bf16.msra.mxu1 %v3717_v32  ;;  %677 = vmatprep.mubr.bf16.mxu1 %v5311_v33  ;;  %v1122_v32 = vld [vmem:[%s5300_s4 + $0xc0] sm:$0xff] }
 0x203   :  { %778 = vmatprep.subr.bf16.mxu1 %v3722_v34  ;;  %v1123_v34 = vld [vmem:[%s5300_s4 + $0xc8] sm:$0xff] }
 0x206   :  { %779 = vmatpush1.bf16.msra.mxu1 %v3720_v36  ;;  %v4378_v36 = vpack.c.bf16 %v1123_v34, %v1122_v32 }
 0x207   :  { %780 = vmatprep.subr.bf16.mxu1 %v3725_v37  ;;  %v1106_v37 = vld [vmem:[%s5300_s4 + $0x40] sm:$0xff] }
 0x209   :  { %678 = vmatmul.mubr.bf16.gmra.mrb[20].mxu1 %v4184_v5 }
 0x20a   :  { %781 = vmatpush1.bf16.msra.mxu1 %v3723_v38  ;;  %800 = vmatprep.mubr.bf16.mxu1 %v5311_v33  ;;  %v1107_v38 = vld [vmem:[%s5300_s4 + $0x48] sm:$0xff] }
 0x20b   :  { %782 = vmatprep.subr.bf16.mxu1 %v3728_v39  ;;  %v4386_v39 = vpack.c.bf16 %v1107_v38, %v1106_v37 }
 0x20d   :  { %5340 = vst [vmem:[#allocation15_spill] sm:$0xff] %v4386_v39 }
 0x20e   :  { %783 = vmatpush1.bf16.msra.mxu1 %v3726_v41  ;;  %v1125_v41 = vld [vmem:[%s5300_s4 + $0xd8] sm:$0xff] }
 0x20f   :  { %938 = vmatprep.subr.bf16.mxu1 %v3731_v43  ;;  %v4396_v43 = vpack.c.bf16 %v1125_v41, %v1124_v40 }
 0x211   :  { %3194 = vmatmul.mubr.msk.bf16.vlgmr.msra.gmra.mrb[8].mxu1 %vm4245_vm6, %v3193_v19  ;;  %v4332_v19 = vpack.c.bf16 %v1101_v18, %v1100_v17  ;;  %5341 = vst [vmem:[#allocation16_spill] sm:$0xff] %v4396_v43 }
 0x212   :  { %939 = vmatpush1.bf16.msra.mxu1 %v3729_v44  ;;  %810 = vmatprep.mubr.bf16.mxu1 %v5311_v33  ;;  %v1108_v44 = vld [vmem:[%s5300_s4 + $0x50] sm:$0xff] }
 0x213   :  { %940 = vmatprep.subr.bf16.mxu1 %v3734_v46  ;;  %v1109_v46 = vld [vmem:[%s5300_s4 + $0x58] sm:$0xff] }
 0x216   :  { %941 = vmatpush1.bf16.msra.mxu1 %v3732_v47  ;;  %v4404_v47 = vpack.c.bf16 %v1109_v46, %v1108_v44 }
 0x217   :  { %942 = vmatprep.subr.bf16.mxu1 %v3737_v49  ;;  %v1126_v49 = vld [vmem:[%s5300_s4 + $0xe0] sm:$0xff] }
 0x218   :  { %5342 = vst [vmem:[#allocation17_spill] sm:$0xff] %v4404_v47 }
 0x219   :  { %811 = vmatmul.mubr.bf16.gmra.mrb[12].mxu1 %v454_v60  ;;  %v3747_v60 = vld [vmem:[#allocation2 + $0x160] ss:$8 sps:$4 sm:$0xff]  }
 0x21a   :  { %943 = vmatpush1.bf16.msra.mxu1 %v3735_v51  ;;  %820 = vmatprep.mubr.bf16.mxu1 %v5311_v33  ;;  %v4414_v51 = vpack.c.bf16 %v1127_v50, %v1126_v49 }
 0x21b   :  { %944 = vmatprep.subr.bf16.mxu1 %v3740_v54  ;;  %v1110_v54 = vld [vmem:[%s5300_s4 + $0x60] sm:$0xff] }
 0x21c   :  { %5343 = vst [vmem:[#allocation18_spill] sm:$0xff] %v4414_v51 }
 0x21e   :  { %945 = vmatpush1.bf16.msra.mxu1 %v3738_v61  ;;  %v4422_v61 = vpack.c.bf16 %v1111_v59, %v1110_v54 }
 0x21f   :  { %946 = vmatprep.subr.bf16.mxu1 %v3743_v62  ;;  %v1128_v62 = vld [vmem:[%s5300_s4 + $0xf0] sm:$0xff] }
 0x220   :  { %5344 = vst [vmem:[#allocation19_spill] sm:$0xff] %v4422_v61 }
 0x221   :  { %3197 = vmatmul.mubr.msk.bf16.gmra.mrb[16].mxu1 %vm4258_vm8, %v3196_v24  ;;  %v1103_v24 = vld [vmem:[%s5300_s4 + $0x28] sm:$0xff] }
 0x222   :  { %947 = vmatpush1.bf16.msra.mxu1 %v3741_v63  ;;  %830 = vmatprep.mubr.bf16.mxu1 %v5311_v33  ;;  %v1129_v63 = vld [vmem:[%s5300_s4 + $0xf8] sm:$0xff] }
 0x223   :  { %948 = vmatprep.subr.bf16.mxu1 %v3746_v1  ;;  %v1112_v1 = vld [vmem:[%s5300_s4 + $0x70] sm:$0xff] }
 0x226   :  { %949 = vmatpush1.bf16.msra.mxu1 %v3744_v53  ;;  %v4434_v53 = vpack.c.bf16 %v1129_v63, %v1128_v62 }
 0x227   :  { %950 = vmatprep.subr.bf16.mxu1 %v3749_v57  ;;  %v1113_v57 = vld [vmem:[%s5300_s4 + $0x78] sm:$0xff] }
 0x228   :  { %5345 = vst [vmem:[#allocation20_spill] sm:$0xff] %v4434_v53 }
 0x229   :  { %831 = vmatmul.mubr.bf16.gmra.mrb[20].mxu1 %v456_v25  ;;  %v4350_v25 = vpack.c.bf16 %v1103_v24, %v1102_v23 }
 0x22a   :  { %951 = vmatpush1.bf16.msra.mxu1 %v3747_v60  ;;  %970 = vmatprep.mubr.bf16.mxu1 %v5311_v33  ;;  %v4440_v60 = vpack.c.bf16 %v1113_v57, %v1112_v1 }
 0x22b   :  { %952 = vmatprep.subr.bf16.mxu1 %v3752_v2 }
 0x22c   :  { %5346 = vst [vmem:[#allocation21_spill] sm:$0xff] %v4440_v60 }
 0x22e   :  { %953 = vmatpush1.bf16.msra.mxu1 %v3750_v3 }
 0x231   :  { %971 = vmatmul.mubr.bf16.vlgmr.msra.gmra.mrb[8].mxu1 %v498_v58  ;;  %v1115_v58 = vld [vmem:[%s5300_s4 + $0x88] sm:$0xff] }
 0x232   :  { %980 = vmatprep.mubr.bf16.mxu1 %v5311_v33  ;;  %v4306_v9 = vpack.c.bf16 %v1115_v58, %v1114_v52 }
 0x234   :  { %3501 = vmatprep.subr.bf16.mxu1 %v4306_v9 }
 0x235   :  { %3503 = vmatpush3.bf16.msra.mxu1 %v4314_v13 }
 0x236   :  { %3505 = vmatprep.subr.bf16.mxu1 %v4324_v16 }
 0x239   :  { %3216 = vmatmul.mubr.msk.bf16.gmra.mrb[12].mxu1 %vm4275_vm10, %v3215_v26  ;;  %v1120_v26 = vld [vmem:[%s5300_s4 + $0xb0] sm:$0xff] }
 0x23a   :  { %990 = vmatprep.mubr.bf16.mxu1 %v5311_v33  ;;  %3507 = vmatpush3.bf16.msra.mxu1 %v4332_v19  ;;  %v4360_v28 = vpack.c.bf16 %v1121_v27, %v1120_v26 }
 0x23b   :  { %3509 = vmatprep.subr.bf16.mxu1 %v4342_v22 }
 0x23e   :  { %3511 = vmatpush3.bf16.msra.mxu1 %v4350_v25 }
 0x23f   :  { %3513 = vmatprep.subr.bf16.mxu1 %v4360_v28 }
 0x241   :  { %991 = vmatmul.mubr.bf16.gmra.mrb[16].mxu1 %v500_v31 }
 0x242   :  { %1000 = vmatprep.mubr.bf16.mxu1 %v5311_v33 }
 0x249   :  { %3219 = vmatmul.mubr.msk.bf16.gmra.mrb[20].mxu1 %vm4291_vm12, %v3218_v30  ;;  %v1105_v30 = vld [vmem:[%s5300_s4 + $0x38] sm:$0xff] }
 0x24a   :  { %v4368_v31 = vpack.c.bf16 %v1105_v30, %v1104_v29 }
 0x24c   :  { %3515 = vmatpush3.bf16.msra.mxu1 %v4368_v31 }
 0x24d   :  { %3517 = vmatprep.subr.bf16.mxu1 %v4378_v36 }
 0x250   :  { %3519 = vmatpush3.bf16.msra.mxu1 %v4386_v39 }
 0x251   :  { %3521 = vmatprep.subr.bf16.mxu1 %v4396_v43 }
 0x254   :  { %3523 = vmatpush3.bf16.msra.mxu1 %v4404_v47 }
 0x255   :  { %3525 = vmatprep.subr.bf16.mxu1 %v4414_v51 }
 0x258   :  { %3527 = vmatpush3.bf16.msra.mxu1 %v4422_v61 }
 0x259   :  { %3529 = vmatprep.subr.bf16.mxu1 %v4434_v53 }
 0x25c   :  { %3531 = vmatpush3.bf16.msra.mxu1 %v4440_v60 }
 0x25d   :  { %3533 = vmatprep.subr.bf16.mxu1 %v4306_v9 }
 0x304   :  { %v4445_v2 = vpop.f32.mrb[8].mxu1 }
 0x305   :  { %v4447_v3 = vpop.f32.mrb[9].mxu1  ;;  %v1053_v6 = vmul.f32 %v4445_v2, %v4445_v2 }
 0x306   :  { %v4449_v4 = vpop.f32.mrb[10].mxu1  ;;  %v1054_v58 = vmul.f32 %v4447_v3, %v4447_v3 }
 0x307   :  { %v1027_v8 = vadd.f32 %v4449_v4, %v4445_v2  ;;  %v1055_v55 = vmul.f32 %v4449_v4, %v4449_v4  ;;  %v4457_v52 = vpop.f32.mrb[11].mxu1 }
 0x308   :  { %v1040_v10 = vadd.f32 %v4457_v52, %v4447_v3  ;;  %v1056_v11 = vmul.f32 %v4457_v52, %v4457_v52 }
 0x309   :  { %v1069_v14 = vadd.f32 %v1055_v55, %v1053_v6 }
 0x30a   :  { %v1082_v15 = vadd.f32 %v1056_v11, %v1054_v58 }
 0x30c   :  { %v4465_v17 = vpop.f32.mrb[12].mxu1 }
 0x30d   :  { %v1028_v18 = vadd.f32 %v1027_v8, %v4465_v17  ;;  %v1057_v20 = vmul.f32 %v4465_v17, %v4465_v17  ;;  %v4470_v21 = vpop.f32.mrb[13].mxu1 }
 0x30e   :  { %v1041_v23 = vadd.f32 %v1040_v10, %v4470_v21  ;;  %v1058_v24 = vmul.f32 %v4470_v21, %v4470_v21  ;;  %v4475_v26 = vpop.f32.mrb[14].mxu1 }
 0x30f   :  { %v1070_v27 = vadd.f32 %v1069_v14, %v1057_v20  ;;  %v1029_v29 = vadd.f32 %v1028_v18, %v4475_v26  ;;  %v1059_v30 = vmul.f32 %v4475_v26, %v4475_v26  ;;  %v4480_v32 = vpop.f32.mrb[15].mxu1 }
 0x310   :  { %v1083_v34 = vadd.f32 %v1082_v15, %v1058_v24  ;;  %v1042_v37 = vadd.f32 %v1041_v23, %v4480_v32  ;;  %v1060_v38 = vmul.f32 %v4480_v32, %v4480_v32 }
 0x311   :  { %v1071_v40 = vadd.f32 %v1070_v27, %v1059_v30 }
 0x312   :  { %v1084_v41 = vadd.f32 %v1083_v34, %v1060_v38 }
 0x314   :  { %v4485_v44 = vpop.f32.mrb[16].mxu1 }
 0x315   :  { %v1030_v46 = vadd.f32 %v1029_v29, %v4485_v44  ;;  %v1061_v49 = vmul.f32 %v4485_v44, %v4485_v44  ;;  %v4490_v50 = vpop.f32.mrb[17].mxu1 }
 0x316   :  { %v1043_v54 = vadd.f32 %v1042_v37, %v4490_v50  ;;  %v1062_v59 = vmul.f32 %v4490_v50, %v4490_v50  ;;  %v4495_v62 = vpop.f32.mrb[18].mxu1 }
 0x317   :  { %v1072_v63 = vadd.f32 %v1071_v40, %v1061_v49  ;;  %v1031_v1 = vadd.f32 %v1030_v46, %v4495_v62  ;;  %v1063_v57 = vmul.f32 %v4495_v62, %v4495_v62  ;;  %v4500_v6 = vpop.f32.mrb[19].mxu1 }
 0x318   :  { %v1085_v8 = vadd.f32 %v1084_v41, %v1062_v59  ;;  %v1044_v55 = vadd.f32 %v1043_v54, %v4500_v6  ;;  %v1064_v58 = vmul.f32 %v4500_v6, %v4500_v6 }
 0x319   :  { %v1073_v10 = vadd.f32 %v1072_v63, %v1063_v57 }
 0x31a   :  { %v1086_v11 = vadd.f32 %v1085_v8, %v1064_v58 }
 0x31c   :  { %v4505_v14 = vpop.f32.mrb[20].mxu1 }
 0x31d   :  { %v1032_v15 = vadd.f32 %v1031_v1, %v4505_v14  ;;  %v1065_v18 = vmul.f32 %v4505_v14, %v4505_v14  ;;  %v4510_v20 = vpop.f32.mrb[21].mxu1 }
 0x31e   :  { %v1045_v23 = vadd.f32 %v1044_v55, %v4510_v20  ;;  %v1066_v24 = vmul.f32 %v4510_v20, %v4510_v20  ;;  %v4515_v27 = vpop.f32.mrb[22].mxu1 }
 0x31f   :  { %v1074_v29 = vadd.f32 %v1073_v10, %v1065_v18  ;;  %v1033_v30 = vadd.f32 %v1032_v15, %v4515_v27  ;;  %v1067_v34 = vmul.f32 %v4515_v27, %v4515_v27  ;;  %v4520_v37 = vpop.f32.mrb[23].mxu1 }
 0x320   :  { %v1087_v38 = vadd.f32 %v1086_v11, %v1066_v24  ;;  %v1046_v40 = vadd.f32 %v1045_v23, %v4520_v37  ;;  %v1068_v41 = vmul.f32 %v4520_v37, %v4520_v37 }
 0x321   :  { %v1034_v46 = vrot.slane %v1033_v30, 4  ;;  %v1075_v49 = vadd.f32 %v1074_v29, %v1067_v34 }
 0x322   :  { %v1047_v54 = vrot.slane %v1046_v40, 4  ;;  %v1088_v59 = vadd.f32 %v1087_v38, %v1068_v41 }
 0x323   :  { %v1035_v63 = vadd.f32 %v1034_v46, %v1033_v30  ;;  %v1076_v1 = vrot.slane %v1075_v49, 4 }
 0x324   :  { %v1048_v57 = vadd.f32 %v1047_v54, %v1046_v40  ;;  %v1089_v8 = vrot.slane %v1088_v59, 4 }
 0x325   :  { %v1036_v55 = vrot.slane %v1035_v63, 2  ;;  %v1077_v58 = vadd.f32 %v1076_v1, %v1075_v49 }
 0x326   :  { %v1049_v10 = vrot.slane %v1048_v57, 2  ;;  %v1090_v15 = vadd.f32 %v1089_v8, %v1088_v59 }
 0x327   :  { %v1037_v18 = vadd.f32 %v1036_v55, %v1035_v63  ;;  %v1078_v33 = vrot.slane %v1077_v58, 2  ;;  %v4008_v55 = vmov 1966171168  }
 0x328   :  { %v1050_v11 = vadd.f32 %v1049_v10, %v1048_v57  ;;  %v1091_v24 = vrot.slane %v1090_v15, 2 }
 0x329   :  { %v1038_v23 = vrot.slane %v1037_v18, 1  ;;  %v1079_v5 = vadd.f32 %v1078_v33, %v1077_v58  ;;  %v1238_v33 = vld [vmem:[%s5299_s3 + $0x8] sm:$0xff]  ;;  %v1211_v58 = vunpack.c.l.s4 %v4008_v55  ;;  %v3770_v55 = vld [vmem:[#allocation5 + $0x154] ss:$8 sps:$4 sm:$0xff]  }
 0x32a   :  { %v1051_v12 = vrot.slane %v1050_v11, 1  ;;  %v1092_v42 = vadd.f32 %v1091_v24, %v1090_v15  ;;  %1243 = vmatprep.subr.mxu0 %v1238_v33 }
 0x32b   :  { %v1080_v48 = vrot.slane %v1079_v5, 1  ;;  %v1039_v34 = vadd.f32 %v1038_v23, %v1037_v18  ;;  %v1212_v10 = vunpack.c.0.s8 %v1211_v58  ;;  %v1206_v23 = vld [vmem:[%s5302_s6] sm:$0x1]  ;;  %v3768_v58 = vld [vmem:[#allocation5 + $0x150] ss:$8 sps:$4 sm:$0xff]  }
 0x32c   :  { %v1093_v29 = vrot.slane %v1092_v42, 1  ;;  %v1052_v38 = vadd.f32 %v1051_v12, %v1050_v11 }
 0x32d   :  { %v1081_v30 = vadd.f32 %v1080_v48, %v1079_v5  ;;  %v5317_v48 = vmov 0.0   ;;  %v3755_v5 = vld [vmem:[#allocation5 + $0x104] ss:$8 sps:$4 sm:$0xff]   ;;  %v4553_v15 = vsub.s32 %v1212_v10, %v4146_v35 }
 0x32e   :  { %v1094_v40 = vadd.f32 %v1093_v29, %v1092_v42  ;;  %v4548_v42 = vld [vmem:[%s5299_s3] sm:$0xff]  ;;  %1307 = vmatprep.mubr.f32.mxu0 %v5317_v48 }
 0x32f   :  { %v1096_v41 = vsel %vm1095_vm13, %v1039_v34, %v1081_v30  ;;  %1244 = vmatpush1.msra.mxu0 %v4548_v42  ;;  %v1227_v30 = vld [vmem:[%s5303_s7] sm:$0x1]  ;;  %v3773_v10 = vld [vmem:[#allocation5 + $0x164] ss:$8 sps:$4 sm:$0xff]  }
 0x330   :  { %v1097_v46 = vsel %vm1095_vm13, %v1052_v38, %v1094_v40  ;;  %1723 = vmatprep.subr.bf16.mxu0 %v3755_v5  ;;  %v4564_v40 = vsub.s32 0, %v4146_v35  ;;  %v3758_v5 = vld [vmem:[#allocation5 + $0x114] ss:$8 sps:$4 sm:$0xff]  }
 0x331   :  { %1194 = vmatprep.mubr.f32.mxu1 %v1097_v46 }
 0x332   :  { %1195 = vmatmul.mubr.f32.vlgmr.msra.gmra.mrb[24].mxu1 %v1096_v41 }
 0x333   :  { %3535 = vmatpush3.bf16.msra.mxu1 %v4314_v13 }
 0x334   :  { %3537 = vmatprep.subr.bf16.mxu1 %v4324_v16 }
 0x337   :  { %3539 = vmatpush3.bf16.msra.mxu1 %v4332_v19 }
 0x338   :  { %3541 = vmatprep.subr.bf16.mxu1 %v4342_v22 }
 0x33b   :  { %3543 = vmatpush3.bf16.msra.mxu1 %v4350_v25 }
 0x33c   :  { %3545 = vmatprep.subr.bf16.mxu1 %v4360_v28 }
 0x33f   :  { %3547 = vmatpush3.bf16.msra.mxu1 %v4368_v31 }
 0x340   :  { %3549 = vmatprep.subr.bf16.mxu1 %v4378_v36 }
 0x343   :  { %3551 = vmatpush3.bf16.msra.mxu1 %v4386_v39  ;;  %v3816_v39 = vld [vmem:[#allocation5 + $0x50] ss:$8 sps:$4 sm:$0xff]  }
 0x344   :  { %3553 = vmatprep.subr.bf16.mxu1 %v4396_v43 }
 0x347   :  { %3555 = vmatpush3.bf16.msra.mxu1 %v4404_v47 }
 0x348   :  { %3557 = vmatprep.subr.bf16.mxu1 %v4414_v51 }
 0x34b   :  { %3559 = vmatpush3.bf16.msra.mxu1 %v4422_v61 }
 0x34c   :  { %3561 = vmatprep.subr.bf16.mxu1 %v4434_v53 }
 0x34f   :  { %3563 = vmatpush3.bf16.msra.mxu1 %v4440_v60 }
 0x350   :  { %2491 = vmatprep.subr.mxu1 %v1238_v33  ;;  %v3753_v33 = vld [vmem:[#allocation5 + $0x100] ss:$8 sps:$4 sm:$0xff]  }
 0x405   :  { %v3403_v12 = vpop.f32.mrb[24].mxu1 }
 0x406   :  { %v3404_v49 = vpop.f32.mrb[25].mxu1 }
 0x407   :  { %v3405_v54 = vadd.f32 %v3404_v49, %v3403_v12  ;;  %v3756_v49 = vld [vmem:[#allocation5 + $0x110] ss:$8 sps:$4 sm:$0xff]  }
 0x409   :  { %v1200_v59 = vmul.f32 0.00048828125, %v3405_v54  ;;  %v3761_v54 = vld [vmem:[#allocation5 + $0x124] ss:$8 sps:$4 sm:$0xff]  }
 0x40b   :  { %v1201_v63 = vmul.f32 %v1200_v59, %v1200_v59 }
 0x40d   :  { %v1203_v1 = vrot.slane %v1201_v63, 7  ;;  %v3759_v63 = vld [vmem:[#allocation5 + $0x120] ss:$8 sps:$4 sm:$0xff]  }
 0x40f   :  { %v1205_v57 = vsub.f32 %v1200_v59, %v1203_v1  ;;  %v3762_v1 = vld [vmem:[#allocation5 + $0x130] ss:$8 sps:$4 sm:$0xff]  }
 0x411   :  { %v1207_v8 = vadd.f32 1e-05, %v1205_v57  ;;  %v3767_v57 = vld [vmem:[#allocation5 + $0x144] ss:$8 sps:$4 sm:$0xff]  }
 0x413   :  { %3921 = vrsqrt.f32 %v1207_v8  ;;  %v3765_v8 = vld [vmem:[#allocation5 + $0x140] ss:$8 sps:$4 sm:$0xff]  }
 0x41d   :  { %v3922_v18 = vpop.eup %3921 }
 0x41e   :  { %v1216_v11 = vrot.slane %v3922_v18, %v4553_v15  ;;  %v3771_v18 = vld [vmem:[#allocation5 + $0x160] ss:$8 sps:$4 sm:$0xff]  }
 0x420   :  { %v1217_v24 = vcombine.high %v1216_v11, %v1216_v11  ;;  %v3776_v11 = vld [vmem:[#allocation5 + $0x174] ss:$8 sps:$4 sm:$0xff]  }
 0x422   :  { %v1224_v29 = vrot.slane %v1217_v24, %v4553_v15  ;;  %v3774_v24 = vld [vmem:[#allocation5 + $0x170] ss:$8 sps:$4 sm:$0xff]  }
 0x424   :  { %v1226_v34 = vmul.f32 %v1224_v29, %v1206_v23  ;;  %v3779_v23 = vld [vmem:[#allocation5 + $0x184] ss:$8 sps:$4 sm:$0xff]   ;;  %v3777_v29 = vld [vmem:[#allocation5 + $0x180] ss:$8 sps:$4 sm:$0xff]  }
 0x426   :  { %v1228_v38 = vmul.f32 %v1226_v34, %v1200_v59  ;;  %v3764_v59 = vld [vmem:[#allocation5 + $0x134] ss:$8 sps:$4 sm:$0xff]  }
 0x428   :  { %v1229_v41 = vsub.f32 %v1227_v30, %v1228_v38  ;;  %v3780_v30 = vld [vmem:[#allocation5 + $0x190] ss:$8 sps:$4 sm:$0xff]   ;;  %v3785_v38 = vld [vmem:[#allocation5 + $0x1a4] ss:$8 sps:$4 sm:$0xff]  }
 0x42a   :  { %v1234_v46 = vrot.slane %v1229_v41, %v4564_v40  ;;  %v3783_v41 = vld [vmem:[#allocation5 + $0x1a0] ss:$8 sps:$4 sm:$0xff]  }
 0x42c   :  { %v1236_v12 = vsel %vm1095_vm13, %v1226_v34, %v1234_v46  ;;  %v3782_v34 = vld [vmem:[#allocation5 + $0x194] ss:$8 sps:$4 sm:$0xff]  }
 0x42d   :  { %3220 = vmatmul.mubr.msk.f32.vlgmr.msra.gmra.mrb[4].mxu0 %vm1239_vm14, %v1236_v12  ;;  %v3788_v46 = vld [vmem:[#allocation5 + $0x1b4] ss:$8 sps:$4 sm:$0xff]   ;;  %v3789_v12 = vld [vmem:[#allocation5 + $0x1c0] ss:$8 sps:$4 sm:$0xff]  }
 0x42e   :  { %1724 = vmatpush1.bf16.msra.mxu0 %v3753_v33  ;;  %v3786_v33 = vld [vmem:[#allocation5 + $0x1b0] ss:$8 sps:$4 sm:$0xff]  }
 0x42f   :  { %1725 = vmatprep.subr.bf16.mxu0 %v3758_v5  ;;  %v3791_v5 = vld [vmem:[#allocation5 + $0x1c4] ss:$8 sps:$4 sm:$0xff]  }
 0x432   :  { %1726 = vmatpush1.bf16.msra.mxu0 %v3756_v49  ;;  %v3794_v49 = vld [vmem:[#allocation5 + $0x1d4] ss:$8 sps:$4 sm:$0xff]  }
 0x433   :  { %1727 = vmatprep.subr.bf16.mxu0 %v3761_v54  ;;  %v3792_v54 = vld [vmem:[#allocation5 + $0x1d0] ss:$8 sps:$4 sm:$0xff]  }
 0x436   :  { %1728 = vmatpush1.bf16.msra.mxu0 %v3759_v63  ;;  %v3797_v63 = vld [vmem:[#allocation5 + $0x1e4] ss:$8 sps:$4 sm:$0xff]  }
 0x437   :  { %1729 = vmatprep.subr.bf16.mxu0 %v3764_v59  ;;  %v3795_v59 = vld [vmem:[#allocation5 + $0x1e0] ss:$8 sps:$4 sm:$0xff]  }
 0x43a   :  { %1730 = vmatpush1.bf16.msra.mxu0 %v3762_v1  ;;  %v3800_v1 = vld [vmem:[#allocation5 + $0x1f4] ss:$8 sps:$4 sm:$0xff]  }
 0x43b   :  { %1731 = vmatprep.subr.bf16.mxu0 %v3767_v57  ;;  %v3798_v57 = vld [vmem:[#allocation5 + $0x1f0] ss:$8 sps:$4 sm:$0xff]  }
 0x43e   :  { %1732 = vmatpush1.bf16.msra.mxu0 %v3765_v8  ;;  %v3803_v8 = vld [vmem:[#allocation5 + $0x4] ss:$8 sps:$4 sm:$0xff]  }
 0x43f   :  { %1733 = vmatprep.subr.bf16.mxu0 %v3770_v55  ;;  %v4570_v55 = vsub.s32 1, %v4146_v35  ;;  %v3822_v35 = vld [vmem:[#allocation5 + $0x70] ss:$8 sps:$4 sm:$0xff]  }
 0x441   :  { %5347 = vst [vmem:[#allocation22_spill] sm:$0xff] %v4570_v55 }
 0x442   :  { %1734 = vmatpush1.bf16.msra.mxu0 %v3768_v58 }
 0x443   :  { %1735 = vmatprep.subr.bf16.mxu0 %v3773_v10 }
 0x446   :  { %1736 = vmatpush1.bf16.msra.mxu0 %v3771_v18 }
 0x447   :  { %1737 = vmatprep.subr.bf16.mxu0 %v3776_v11 }
 0x44a   :  { %1738 = vmatpush1.bf16.msra.mxu0 %v3774_v24 }
 0x44b   :  { %1739 = vmatprep.subr.bf16.mxu0 %v3779_v23 }
 0x44e   :  { %1740 = vmatpush1.bf16.msra.mxu0 %v3777_v29 }
 0x44f   :  { %1741 = vmatprep.subr.bf16.mxu0 %v3782_v34 }
 0x452   :  { %1742 = vmatpush1.bf16.msra.mxu0 %v3780_v30 }
 0x453   :  { %1743 = vmatprep.subr.bf16.mxu0 %v3785_v38 }
 0x456   :  { %1744 = vmatpush1.bf16.msra.mxu0 %v3783_v41 }
 0x457   :  { %1745 = vmatprep.subr.bf16.mxu0 %v3788_v46 }
 0x45a   :  { %1746 = vmatpush1.bf16.msra.mxu0 %v3786_v33 }
 0x45b   :  { %1747 = vmatprep.subr.bf16.mxu0 %v3791_v5 }
 0x45e   :  { %1748 = vmatpush1.bf16.msra.mxu0 %v3789_v12 }
 0x45f   :  { %1749 = vmatprep.subr.bf16.mxu0 %v3794_v49 }
 0x462   :  { %1750 = vmatpush1.bf16.msra.mxu0 %v3792_v54 }
 0x463   :  { %1751 = vmatprep.subr.bf16.mxu0 %v3797_v63 }
 0x466   :  { %1752 = vmatpush1.bf16.msra.mxu0 %v3795_v59 }
 0x467   :  { %1753 = vmatprep.subr.bf16.mxu0 %v3800_v1 }
 0x46a   :  { %1754 = vmatpush1.bf16.msra.mxu0 %v3798_v57 }
 0x46b   :  { %1956 = vmatprep.subr.bf16.mxu0 %v3803_v8 }
 0x500   :  { %v1309_v58 = vpop.f32.mrb[4].mxu0 }
 0x501   :  { %v1317_v10 = vrot.slane %v1309_v58, %v4564_v40  ;;  %v1311_v18 = vpop.f32.mrb[5].mxu0  ;;  %v4574_v11 = vrot.slane %v1309_v58, %v4570_v55 }
 0x502   :  { %v1321_v24 = vrot.slane %v1311_v18, %v4564_v40  ;;  %v1345_v23 = vrot.slane %v1311_v18, %v4570_v55 }
 0x503   :  { %v1322_v29 = vmul.f32 %v1317_v10, %v4445_v2  ;;  %v1324_v34 = vmul.f32 %v1317_v10, %v4449_v4  ;;  %v1326_v30 = vmul.f32 %v1317_v10, %v4465_v17  ;;  %v1328_v38 = vmul.f32 %v1317_v10, %v4475_v26 }
 0x504   :  { %v1323_v41 = vmul.f32 %v1321_v24, %v4447_v3  ;;  %v1325_v46 = vmul.f32 %v1321_v24, %v4457_v52  ;;  %v1327_v33 = vmul.f32 %v1321_v24, %v4470_v21  ;;  %v1329_v5 = vmul.f32 %v1321_v24, %v4480_v32 }
 0x505   :  { %v1346_v12 = vadd.f32 %v4574_v11, %v1322_v29  ;;  %v1348_v49 = vadd.f32 %v4574_v11, %v1324_v34  ;;  %v1350_v2 = vadd.f32 %v4574_v11, %v1326_v30  ;;  %v1352_v4 = vadd.f32 %v4574_v11, %v1328_v38  ;;  %v3801_v38 = vld [vmem:[#allocation5] ss:$8 sps:$4 sm:$0xff]  }
 0x506   :  { %v1347_v54 = vadd.f32 %v1345_v23, %v1323_v41  ;;  %v1349_v17 = vadd.f32 %v1345_v23, %v1325_v46  ;;  %v1351_v63 = vadd.f32 %v1345_v23, %v1327_v33  ;;  %v1353_v26 = vadd.f32 %v1345_v23, %v1329_v5  ;;  %v3806_v5 = vld [vmem:[#allocation5 + $0x14] ss:$8 sps:$4 sm:$0xff]  }
 0x507   :  { %v4590_v59 = vmax.f32 %v1346_v12, 0.0  ;;  %v4592_v3 = vmax.f32 %v1348_v49, 0.0  ;;  %v4594_v52 = vmax.f32 %v1350_v2, 0.0  ;;  %v4596_v21 = vmax.f32 %v1352_v4, 0.0 }
 0x508   :  { %v4598_v32 = vmax.f32 %v1347_v54, 0.0  ;;  %v4600_v1 = vmax.f32 %v1349_v17, 0.0  ;;  %v4602_v57 = vmax.f32 %v1351_v63, 0.0  ;;  %v4604_v8 = vmax.f32 %v1353_v26, 0.0 }
 0x509   :  { %v1378_v58 = vpack.c.bf16 %v4592_v3, %v4590_v59  ;;  %v1386_v18 = vrot.slane %v4590_v59, 7  ;;  %v1388_v29 = vrot.slane %v4592_v3, 7  ;;  %v1380_v33 = vpack.c.bf16 %v4596_v21, %v4594_v52 }
 0x50a   :  { %v1379_v30 = vpack.c.bf16 %v4600_v1, %v4598_v32  ;;  %v1381_v46 = vpack.c.bf16 %v4604_v8, %v4602_v57  ;;  %v1331_v49 = vmul.f32 %v1321_v24, %v4490_v50  ;;  %v1333_v2 = vmul.f32 %v1321_v24, %v4500_v6  ;;  %v3804_v6 = vld [vmem:[#allocation5 + $0x10] ss:$8 sps:$4 sm:$0xff]  }
 0x50b   :  { %v1330_v4 = vmul.f32 %v1317_v10, %v4485_v44  ;;  %v1332_v54 = vmul.f32 %v1317_v10, %v4495_v62  ;;  %v1335_v17 = vmul.f32 %v1321_v24, %v4510_v20  ;;  %v1337_v63 = vmul.f32 %v1321_v24, %v4520_v37  ;;  %v3809_v37 = vld [vmem:[#allocation5 + $0x24] ss:$8 sps:$4 sm:$0xff]  }
 0x50c   :  { %1755 = vmatprep.mubr.bf16.mxu0 %v1379_v30  ;;  %v1334_v26 = vmul.f32 %v1317_v10, %v4505_v14  ;;  %v1355_v48 = vadd.f32 %v1345_v23, %v1331_v49  ;;  %v1357_v34 = vadd.f32 %v1345_v23, %v1333_v2  ;;  %v1336_v50 = vmul.f32 %v1317_v10, %v4515_v27 }
 0x50d   :  { %1756 = vmatmul.mubr.bf16.vlgmr.msra.gmra.mrb[8].mxu0 %v1378_v58  ;;  %v1354_v41 = vadd.f32 %v4574_v11, %v1330_v4  ;;  %v1356_v44 = vadd.f32 %v4574_v11, %v1332_v54  ;;  %v1359_v30 = vadd.f32 %v1345_v23, %v1335_v17  ;;  %v1361_v62 = vadd.f32 %v1345_v23, %v1337_v63  ;;  %v3812_v17 = vld [vmem:[#allocation5 + $0x34] ss:$8 sps:$4 sm:$0xff]  }
 0x50e   :  { %1957 = vmatpush1.bf16.msra.mxu0 %v3801_v38  ;;  %1765 = vmatprep.mubr.bf16.mxu0 %v1381_v46  ;;  %v1387_v20 = vrot.slane %v4598_v32, 7  ;;  %v4630_v24 = vmax.f32 %v1355_v48, 0.0  ;;  %v4632_v14 = vmax.f32 %v1357_v34, 0.0  ;;  %v1358_v49 = vadd.f32 %v4574_v11, %v1334_v26 }
 0x50f   :  { %1958 = vmatprep.subr.bf16.mxu0 %v3806_v5  ;;  %v4634_v58 = vmax.f32 %v1354_v41, 0.0  ;;  %v4637_v27 = vmax.f32 %v1356_v44, 0.0  ;;  %v4639_v10 = vmax.f32 %v1359_v30, 0.0  ;;  %v4641_v38 = vmax.f32 %v1361_v62, 0.0  ;;  %v3807_v41 = vld [vmem:[#allocation5 + $0x20] ss:$8 sps:$4 sm:$0xff]  }
 0x510   :  { %v1360_v23 = vadd.f32 %v4574_v11, %v1336_v50  ;;  %v1383_v46 = vpack.c.bf16 %v4632_v14, %v4630_v24  ;;  %v4646_v5 = vmax.f32 %v1358_v49, 0.0  ;;  %v1389_v48 = vrot.slane %v4600_v1, 7 }
 0x511   :  { %v4655_v34 = vsel %vm420_vm3, %v1386_v18, %v1388_v29  ;;  %v1382_v11 = vpack.c.bf16 %v4637_v27, %v4634_v58  ;;  %v1385_v2 = vpack.c.bf16 %v4641_v38, %v4639_v10  ;;  %v1401_v54 = vrot.slane %v4641_v38, 7 }
 0x512   :  { %1959 = vmatpush1.bf16.msra.mxu0 %v3804_v6  ;;  %v4661_v4 = vmax.f32 %v1360_v23, 0.0  ;;  %v4666_v63 = vsel %vm420_vm3, %v1387_v20, %v1389_v48  ;;  %v1391_v26 = vrot.slane %v4602_v57, 7  ;;  %v1393_v50 = vrot.slane %v4604_v8, 7 }
 0x513   :  { %1960 = vmatprep.subr.bf16.mxu0 %v3809_v37  ;;  %v1390_v6 = vrot.slane %v4594_v52, 7  ;;  %v4676_v62 = vsel %vm420_vm3, %v1401_v54, %v1387_v20  ;;  %v1392_v37 = vrot.slane %v4596_v21, 7  ;;  %v1394_v55 = vrot.slane %v4634_v58, 7 }
 0x514   :  { %v1400_v30 = vrot.slane %v4661_v4, 7  ;;  %v4683_v23 = vsel %vm420_vm3, %v1391_v26, %v1393_v50  ;;  %v4687_v12 = vsel %vm420_vm3, %v1389_v48, %v1391_v26  ;;  %v1395_v26 = vrot.slane %v4630_v24, 7 }
 0x515   :  { %1766 = vmatmul.mubr.bf16.gmra.mrb[12].mxu0 %v1380_v33  ;;  %v4693_v20 = vsel %vm420_vm3, %v1388_v29, %v1390_v6  ;;  %v3810_v33 = vld [vmem:[#allocation5 + $0x30] ss:$8 sps:$4 sm:$0xff]   ;;  %v4705_v48 = vsel %vm420_vm3, %v1390_v6, %v1392_v37  ;;  %v3815_v29 = vld [vmem:[#allocation5 + $0x44] ss:$8 sps:$4 sm:$0xff]   ;;  %v1396_v6 = vrot.slane %v4637_v27, 7  ;;  %v1399_v60 = vrot.slane %v4639_v10, 7 }
 0x516   :  { %1961 = vmatpush1.bf16.msra.mxu0 %v3807_v41  ;;  %1775 = vmatprep.mubr.bf16.mxu0 %v1383_v46  ;;  %v4699_v49 = vsel %vm420_vm3, %v1400_v30, %v1386_v18  ;;  %v1397_v18 = vrot.slane %v4632_v14, 7  ;;  %v4716_v44 = vsel %vm420_vm3, %v1393_v50, %v1395_v26  ;;  %v4727_v41 = vsel %vm420_vm3, %v1392_v37, %v1394_v55  ;;  %v3813_v50 = vld [vmem:[#allocation5 + $0x40] ss:$8 sps:$4 sm:$0xff]  }
 0x517   :  { %1962 = vmatprep.subr.bf16.mxu0 %v3812_v17  ;;  %v1398_v17 = vrot.slane %v4646_v5, 7  ;;  %v1443_v53 = vrot.slane %v4598_v32, 1  ;;  %v1445_v61 = vrot.slane %v4600_v1, 1  ;;  %v4735_v47 = vsel %vm420_vm3, %v1394_v55, %v1396_v6  ;;  %v3818_v32 = vld [vmem:[#allocation5 + $0x54] ss:$8 sps:$4 sm:$0xff]  }
 0x518   :  { %v4723_v46 = vsel %vm420_vm3, %v1395_v26, %v1397_v18  ;;  %v4739_v26 = vsel %vm420_vm3, %v1399_v60, %v1401_v54  ;;  %v4743_v37 = vsel %vm420_vm3, %v1397_v18, %v1399_v60  ;;  %v5348_v1 = vrot.slane %v4594_v52, 1 }
 0x519   :  { %v4751_v55 = vsel %vm420_vm3, %v1398_v17, %v1400_v30  ;;  %v4755_v54 = vsel %vm420_vm3, %v1396_v6, %v1398_v17  ;;  %v4762_v18 = vsel %vm465_vm2, %v1443_v53, %v1445_v61  ;;  %v5351_v17 = vrot.slane %v4590_v59, 1 }
 0x51a   :  { %1963 = vmatpush1.bf16.msra.mxu0 %v3810_v33  ;;  %v5349_v33 = vrot.slane %v4592_v3, 1  ;;  %v1449_v60 = vrot.slane %v4604_v8, 1  ;;  %v1451_v51 = vrot.slane %v4630_v24, 1  ;;  %v1448_v43 = vrot.slane %v4596_v21, 1  ;;  %v3821_v8 = vld [vmem:[#allocation5 + $0x64] ss:$8 sps:$4 sm:$0xff]  }
 0x51b   :  { %1964 = vmatprep.subr.bf16.mxu0 %v3815_v29  ;;  %v1447_v29 = vrot.slane %v4602_v57, 1  ;;  %v5359_v45 = vpack.c.bf16 %v4723_v46, %v4716_v44  ;;  %v5361_v44 = vpack.c.bf16 %v4739_v26, %v4743_v37  ;;  %v3867_v46 = vld [vmem:[#allocation5 + $0x260] ss:$8 sps:$4 sm:$0xff]   ;;  %v3878_v26 = vld [vmem:[#allocation5 + $0x294] ss:$8 sps:$4 sm:$0xff]  }
 0x51c   :  { %v4770_v30 = vsel %vm465_vm2, %v5349_v33, %v5348_v1  ;;  %v5350_v6 = vmov %v5349_v33  ;;  %v1450_v1 = vrot.slane %v4634_v58, 1  ;;  %v1453_v33 = vrot.slane %v4632_v14, 1  ;;  %v3876_v37 = vld [vmem:[#allocation5 + $0x290] ss:$8 sps:$4 sm:$0xff]  }
 0x51d   :  { %1776 = vmatmul.mubr.bf16.gmra.mrb[16].mxu0 %v1382_v11  ;;  %v4778_v57 = vsel %vm465_vm2, %v5351_v17, %v5350_v6  ;;  %v4785_v11 = vsel %vm465_vm2, %v1445_v61, %v1447_v29  ;;  %v4795_v21 = vsel %vm465_vm2, %v1449_v60, %v1451_v51  ;;  %v4799_v61 = vsel %vm465_vm2, %v1447_v29, %v1449_v60 }
 0x51e   :  { %1965 = vmatpush1.bf16.msra.mxu0 %v3813_v50  ;;  %1785 = vmatprep.mubr.bf16.mxu0 %v1385_v2  ;;  %v1490_v3 = vpack.c.bf16 %v4770_v30, %v4778_v57  ;;  %v1491_v24 = vpack.c.bf16 %v4785_v11, %v4762_v18  ;;  %v5352_v2 = vrot.slane %v4594_v52, 1  ;;  %v4811_v50 = vsel %vm465_vm2, %v1448_v43, %v1450_v1  ;;  %v3887_v18 = vld [vmem:[#allocation5 + $0x2c4] ss:$8 sps:$4 sm:$0xff]   ;;  %v3885_v11 = vld [vmem:[#allocation5 + $0x2c0] ss:$8 sps:$4 sm:$0xff]  }
 0x51f   :  { %1966 = vmatprep.subr.bf16.mxu0 %v3818_v32  ;;  %v1455_v32 = vrot.slane %v4639_v10, 1  ;;  %v4816_v6 = vsel %vm465_vm2, %v1451_v51, %v1453_v33  ;;  %v1452_v60 = vrot.slane %v4637_v27, 1  ;;  %v1454_v29 = vrot.slane %v4646_v5, 1  ;;  %v3824_v51 = vld [vmem:[#allocation5 + $0x74] ss:$8 sps:$4 sm:$0xff]  }
 0x520   :  { %v4805_v58 = vsel %vm465_vm2, %v5352_v2, %v1448_v43  ;;  %v1457_v17 = vrot.slane %v4641_v38, 1  ;;  %v3819_v2 = vld [vmem:[#allocation5 + $0x60] ss:$8 sps:$4 sm:$0xff]   ;;  %v1456_v10 = vrot.slane %v4661_v4, 1  ;;  %v5353_v52 = vrot.slane %v4590_v59, 1 }
 0x521   :  { %v4825_v43 = vsel %vm465_vm2, %v1453_v33, %v1455_v32  ;;  %v4832_v27 = vsel %vm465_vm2, %v1452_v60, %v1454_v29  ;;  %v4836_v38 = vsel %vm465_vm2, %v1450_v1, %v1452_v60  ;;  %v3827_v59 = vld [vmem:[#allocation5 + $0x84] ss:$8 sps:$4 sm:$0xff]  }
 0x522   :  { %1967 = vmatpush1.bf16.msra.mxu0 %v3816_v39  ;;  %v4840_v39 = vsel %vm465_vm2, %v1455_v32, %v1457_v17  ;;  %v1494_v33 = vpack.c.bf16 %v4832_v27, %v4836_v38  ;;  %v4850_v14 = vsel %vm465_vm2, %v1454_v29, %v1456_v10  ;;  %v4856_v1 = vsel %vm465_vm2, %v1456_v10, %v5353_v52  ;;  %v3825_v52 = vld [vmem:[#allocation5 + $0x80] ss:$8 sps:$4 sm:$0xff]  }
 0x523   :  { %1968 = vmatprep.subr.bf16.mxu0 %v3821_v8  ;;  %v4846_v8 = vsel %vm465_vm2, %v1457_v17, %v1443_v53  ;;  %v5354_v32 = vpack.c.bf16 %v4661_v4, %v4646_v5  ;;  %v3339_v53 = vpack.c.bf16 %v4856_v1, %v4850_v14  ;;  %v5355_v29 = vpack.c.bf16 %v4666_v63, %v4676_v62  ;;  %v3830_v5 = vld [vmem:[#allocation5 + $0x94] ss:$8 sps:$4 sm:$0xff]   ;;  %v3828_v4 = vld [vmem:[#allocation5 + $0x90] ss:$8 sps:$4 sm:$0xff]   ;;  %v3833_v17 = vld [vmem:[#allocation5 + $0xa4] ss:$8 sps:$4 sm:$0xff]  }
 0x524   :  { %v3336_v60 = vpack.c.bf16 %v4846_v8, %v4840_v39  ;;  %v3831_v10 = vld [vmem:[#allocation5 + $0xa0] ss:$8 sps:$4 sm:$0xff]   ;;  %v3834_v63 = vld [vmem:[#allocation5 + $0xb0] ss:$8 sps:$4 sm:$0xff]   ;;  %v3839_v62 = vld [vmem:[#allocation5 + $0xc4] ss:$8 sps:$4 sm:$0xff]  }
 0x525   :  { %1786 = vmatmul.mubr.bf16.gmra.mrb[20].mxu0 %v5354_v32  ;;  %v3837_v32 = vld [vmem:[#allocation5 + $0xc0] ss:$8 sps:$4 sm:$0xff]  }
 0x526   :  { %1969 = vmatpush1.bf16.msra.mxu0 %v3819_v2  ;;  %3287 = vmatprep.mubr.msk.bf16.mxu0 %vm4245_vm6, %v5355_v29  ;;  %v3836_v2 = vld [vmem:[#allocation5 + $0xb4] ss:$8 sps:$4 sm:$0xff]   ;;  %v3840_v29 = vld [vmem:[#allocation5 + $0xd0] ss:$8 sps:$4 sm:$0xff]  }
 0x527   :  { %1970 = vmatprep.subr.bf16.mxu0 %v3824_v51  ;;  %v3842_v51 = vld [vmem:[#allocation5 + $0xd4] ss:$8 sps:$4 sm:$0xff]  }
 0x52a   :  { %1971 = vmatpush1.bf16.msra.mxu0 %v3822_v35  ;;  %v3845_v35 = vld [vmem:[#allocation5 + $0xe4] ss:$8 sps:$4 sm:$0xff]  }
 0x52b   :  { %1972 = vmatprep.subr.bf16.mxu0 %v3827_v59  ;;  %v3843_v59 = vld [vmem:[#allocation5 + $0xe0] ss:$8 sps:$4 sm:$0xff]  }
 0x52e   :  { %1973 = vmatpush1.bf16.msra.mxu0 %v3825_v52  ;;  %v3848_v52 = vld [vmem:[#allocation5 + $0xf4] ss:$8 sps:$4 sm:$0xff]  }
 0x52f   :  { %1974 = vmatprep.subr.bf16.mxu0 %v3830_v5  ;;  %v3846_v5 = vld [vmem:[#allocation5 + $0xf0] ss:$8 sps:$4 sm:$0xff]  }
 0x532   :  { %1975 = vmatpush1.bf16.msra.mxu0 %v3828_v4  ;;  %v3851_v4 = vld [vmem:[#allocation5 + $0x204] ss:$8 sps:$4 sm:$0xff]  }
 0x533   :  { %1976 = vmatprep.subr.bf16.mxu0 %v3833_v17  ;;  %v3849_v17 = vld [vmem:[#allocation5 + $0x200] ss:$8 sps:$4 sm:$0xff]  }
 0x536   :  { %1977 = vmatpush1.bf16.msra.mxu0 %v3831_v10  ;;  %v3854_v10 = vld [vmem:[#allocation5 + $0x214] ss:$8 sps:$4 sm:$0xff]  }
 0x537   :  { %1978 = vmatprep.subr.bf16.mxu0 %v3836_v2  ;;  %v5356_v2 = vpack.c.bf16 %v4655_v34, %v4699_v49  ;;  %v3863_v34 = vld [vmem:[#allocation5 + $0x244] ss:$8 sps:$4 sm:$0xff]   ;;  %v3861_v49 = vld [vmem:[#allocation5 + $0x240] ss:$8 sps:$4 sm:$0xff]  }
 0x53a   :  { %1979 = vmatpush1.bf16.msra.mxu0 %v3834_v63  ;;  %v5357_v63 = vpack.c.bf16 %v4683_v23, %v4687_v12  ;;  %v3858_v12 = vld [vmem:[#allocation5 + $0x230] ss:$8 sps:$4 sm:$0xff]   ;;  %v3866_v23 = vld [vmem:[#allocation5 + $0x254] ss:$8 sps:$4 sm:$0xff]  }
 0x53b   :  { %1980 = vmatprep.subr.bf16.mxu0 %v3839_v62  ;;  %v3852_v62 = vld [vmem:[#allocation5 + $0x210] ss:$8 sps:$4 sm:$0xff]  }
 0x53e   :  { %1981 = vmatpush1.bf16.msra.mxu0 %v3837_v32  ;;  %v3857_v32 = vld [vmem:[#allocation5 + $0x224] ss:$8 sps:$4 sm:$0xff]  }
 0x53f   :  { %1982 = vmatprep.subr.bf16.mxu0 %v3842_v51  ;;  %v3855_v51 = vld [vmem:[#allocation5 + $0x220] ss:$8 sps:$4 sm:$0xff]  }
 0x542   :  { %1983 = vmatpush1.bf16.msra.mxu0 %v3840_v29  ;;  %v3860_v29 = vld [vmem:[#allocation5 + $0x234] ss:$8 sps:$4 sm:$0xff]  }
 0x543   :  { %1984 = vmatprep.subr.bf16.mxu0 %v3845_v35  ;;  %v5358_v35 = vpack.c.bf16 %v4705_v48, %v4693_v20  ;;  %v3864_v20 = vld [vmem:[#allocation5 + $0x250] ss:$8 sps:$4 sm:$0xff]   ;;  %v3869_v48 = vld [vmem:[#allocation5 + $0x264] ss:$8 sps:$4 sm:$0xff]  }
 0x546   :  { %1985 = vmatpush1.bf16.msra.mxu0 %v3843_v59  ;;  %v5360_v59 = vpack.c.bf16 %v4735_v47, %v4727_v41  ;;  %v3875_v47 = vld [vmem:[#allocation5 + $0x284] ss:$8 sps:$4 sm:$0xff]   ;;  %v3873_v41 = vld [vmem:[#allocation5 + $0x280] ss:$8 sps:$4 sm:$0xff]  }
 0x547   :  { %1986 = vmatprep.subr.bf16.mxu0 %v3848_v52  ;;  %v3872_v52 = vld [vmem:[#allocation5 + $0x274] ss:$8 sps:$4 sm:$0xff]  }
 0x54a   :  { %1987 = vmatpush1.bf16.msra.mxu0 %v3846_v5  ;;  %v5362_v5 = vpack.c.bf16 %v4751_v55, %v4755_v54  ;;  %v3884_v55 = vld [vmem:[#allocation5 + $0x2b4] ss:$8 sps:$4 sm:$0xff]   ;;  %v3882_v54 = vld [vmem:[#allocation5 + $0x2b0] ss:$8 sps:$4 sm:$0xff]  }
 0x54b   :  { %2222 = vmatprep.subr.bf16.mxu0 %v3851_v4  ;;  %v3881_v4 = vld [vmem:[#allocation5 + $0x2a4] ss:$8 sps:$4 sm:$0xff]  }
 0x54d   :  { %3290 = vmatmul.mubr.msk.bf16.vlgmr.msra.gmra.mrb[8].mxu0 %vm4245_vm6, %v5356_v2  ;;  %v3893_v2 = vld [vmem:[#allocation5 + $0x2e4] ss:$8 sps:$4 sm:$0xff]  }
 0x54e   :  { %1998 = vmatprep.mubr.bf16.mxu0 %v5357_v63  ;;  %2223 = vmatpush1.bf16.msra.mxu0 %v3849_v17  ;;  %v3879_v17 = vld [vmem:[#allocation5 + $0x2a0] ss:$8 sps:$4 sm:$0xff]  }
 0x54f   :  { %2224 = vmatprep.subr.bf16.mxu0 %v3854_v10  ;;  %v3888_v10 = vld [vmem:[#allocation5 + $0x2d0] ss:$8 sps:$4 sm:$0xff]   ;;  %v3891_v63 = vld [vmem:[#allocation5 + $0x2e0] ss:$8 sps:$4 sm:$0xff]  }
 0x552   :  { %2225 = vmatpush1.bf16.msra.mxu0 %v3852_v62  ;;  %v3896_v62 = vld [vmem:[#allocation5 + $0x2f4] ss:$8 sps:$4 sm:$0xff]  }
 0x553   :  { %2226 = vmatprep.subr.bf16.mxu0 %v3857_v32  ;;  %v3894_v32 = vld [vmem:[#allocation5 + $0x2f0] ss:$8 sps:$4 sm:$0xff]  }
 0x555   :  { %1999 = vmatmul.mubr.bf16.gmra.mrb[12].mxu0 %v5358_v35  ;;  %v5365_v35 = vpack.c.bf16 %v4825_v43, %v4816_v6 }
 0x556   :  { %3293 = vmatprep.mubr.msk.bf16.mxu0 %vm4258_vm8, %v5359_v45  ;;  %2227 = vmatpush1.bf16.msra.mxu0 %v3855_v51  ;;  %v5363_v51 = vpack.c.bf16 %v4795_v21, %v4799_v61 }
 0x557   :  { %2228 = vmatprep.subr.bf16.mxu0 %v3860_v29  ;;  %v5364_v29 = vpack.c.bf16 %v4811_v50, %v4805_v58 }
 0x55a   :  { %2229 = vmatpush1.bf16.msra.mxu0 %v3858_v12 }
 0x55b   :  { %2230 = vmatprep.subr.bf16.mxu0 %v3863_v34 }
 0x55d   :  { %3296 = vmatmul.mubr.msk.bf16.gmra.mrb[16].mxu0 %vm4258_vm8, %v5360_v59 }
 0x55e   :  { %2018 = vmatprep.mubr.bf16.mxu0 %v5361_v44  ;;  %2231 = vmatpush1.bf16.msra.mxu0 %v3861_v49 }
 0x55f   :  { %2232 = vmatprep.subr.bf16.mxu0 %v3866_v23 }
 0x562   :  { %2233 = vmatpush1.bf16.msra.mxu0 %v3864_v20 }
 0x563   :  { %2234 = vmatprep.subr.bf16.mxu0 %v3869_v48 }
 0x565   :  { %2019 = vmatmul.mubr.bf16.gmra.mrb[20].mxu0 %v5362_v5 }
 0x566   :  { %2235 = vmatpush1.bf16.msra.mxu0 %v3867_v46  ;;  %2254 = vmatprep.mubr.bf16.mxu0 %v1491_v24  ;;  %v3890_v24 = vld [vmem:[#allocation5 + $0x2d4] ss:$8 sps:$4 sm:$0xff]  }
 0x567   :  { %2236 = vmatprep.subr.bf16.mxu0 %v3872_v52 }
 0x56a   :  { %2237 = vmatpush1.bf16.msra.mxu0 %v3870_v0 }
 0x56b   :  { %2238 = vmatprep.subr.bf16.mxu0 %v3875_v47 }
 0x56e   :  { %2239 = vmatpush1.bf16.msra.mxu0 %v3873_v41 }
 0x56f   :  { %2240 = vmatprep.subr.bf16.mxu0 %v3878_v26 }
 0x572   :  { %2241 = vmatpush1.bf16.msra.mxu0 %v3876_v37 }
 0x573   :  { %2242 = vmatprep.subr.bf16.mxu0 %v3881_v4 }
 0x576   :  { %2243 = vmatpush1.bf16.msra.mxu0 %v3879_v17 }
 0x577   :  { %2244 = vmatprep.subr.bf16.mxu0 %v3884_v55 }
 0x57a   :  { %2245 = vmatpush1.bf16.msra.mxu0 %v3882_v54 }
 0x57b   :  { %2246 = vmatprep.subr.bf16.mxu0 %v3887_v18 }
 0x57e   :  { %2247 = vmatpush1.bf16.msra.mxu0 %v3885_v11 }
 0x57f   :  { %2248 = vmatprep.subr.bf16.mxu0 %v3890_v24 }
 0x582   :  { %2249 = vmatpush1.bf16.msra.mxu0 %v3888_v10 }
 0x583   :  { %2250 = vmatprep.subr.bf16.mxu0 %v3893_v2 }
 0x586   :  { %2251 = vmatpush1.bf16.msra.mxu0 %v3891_v63 }
 0x587   :  { %2252 = vmatprep.subr.bf16.mxu0 %v3896_v62 }
 0x58a   :  { %2253 = vmatpush1.bf16.msra.mxu0 %v3894_v32 }
 0x58d   :  { %2255 = vmatmul.mubr.bf16.vlgmr.msra.gmra.mrb[8].mxu0 %v1490_v3 }
 0x58e   :  { %3331 = vmatprep.mubr.msk.bf16.mxu0 %vm4275_vm10, %v5363_v51 }
 0x595   :  { %3334 = vmatmul.mubr.msk.bf16.gmra.mrb[12].mxu0 %vm4275_vm10, %v5364_v29 }
 0x596   :  { %2274 = vmatprep.mubr.bf16.mxu0 %v5365_v35 }
 0x59d   :  { %2275 = vmatmul.mubr.bf16.gmra.mrb[16].mxu0 %v1494_v33 }
 0x59e   :  { %3337 = vmatprep.mubr.msk.bf16.mxu0 %vm4291_vm12, %v3336_v60 }
 0x5a5   :  { %3340 = vmatmul.mubr.msk.bf16.gmra.mrb[20].mxu0 %vm4291_vm12, %v3339_v53 }
 0x660   :  { %v4929_v7 = vpop.f32.mrb[8].mxu0 }
 0x661   :  { %v4931_v30 = vpop.f32.mrb[9].mxu0  ;;  %v2337_v3 = vmul.f32 %v4929_v7, %v4929_v7 }
 0x662   :  { %v4933_v57 = vpop.f32.mrb[10].mxu0  ;;  %v2338_v56 = vmul.f32 %v4931_v30, %v4931_v30 }
 0x663   :  { %v2311_v21 = vadd.f32 %v4933_v57, %v4929_v7  ;;  %v2339_v61 = vmul.f32 %v4933_v57, %v4933_v57  ;;  %v4941_v58 = vpop.f32.mrb[11].mxu0 }
 0x664   :  { %v2324_v14 = vadd.f32 %v4941_v58, %v4931_v30  ;;  %v2340_v50 = vmul.f32 %v4941_v58, %v4941_v58 }
 0x665   :  { %v2353_v6 = vadd.f32 %v2339_v61, %v2337_v3 }
 0x666   :  { %v2366_v43 = vadd.f32 %v2340_v50, %v2338_v56 }
 0x668   :  { %v4949_v27 = vpop.f32.mrb[12].mxu0 }
 0x669   :  { %v2312_v38 = vadd.f32 %v2311_v21, %v4949_v27  ;;  %v2341_v39 = vmul.f32 %v4949_v27, %v4949_v27  ;;  %v4954_v33 = vpop.f32.mrb[13].mxu0 }
 0x66a   :  { %v2325_v8 = vadd.f32 %v2324_v14, %v4954_v33  ;;  %v2342_v1 = vmul.f32 %v4954_v33, %v4954_v33  ;;  %v4959_v60 = vpop.f32.mrb[14].mxu0 }
 0x66b   :  { %v2354_v53 = vadd.f32 %v2353_v6, %v2341_v39  ;;  %v2313_v45 = vadd.f32 %v2312_v38, %v4959_v60  ;;  %v2343_v12 = vmul.f32 %v4959_v60, %v4959_v60  ;;  %v4964_v34 = vpop.f32.mrb[15].mxu0 }
 0x66c   :  { %v2367_v49 = vadd.f32 %v2366_v43, %v2342_v1  ;;  %v2326_v23 = vadd.f32 %v2325_v8, %v4964_v34  ;;  %v2344_v59 = vmul.f32 %v4964_v34, %v4964_v34 }
 0x66d   :  { %v2355_v44 = vadd.f32 %v2354_v53, %v2343_v12 }
 0x66e   :  { %v2368_v20 = vadd.f32 %v2367_v49, %v2344_v59 }
 0x670   :  { %v4969_v48 = vpop.f32.mrb[16].mxu0 }
 0x671   :  { %v2314_v46 = vadd.f32 %v2313_v45, %v4969_v48  ;;  %v2345_v52 = vmul.f32 %v4969_v48, %v4969_v48  ;;  %v4974_v5 = vpop.f32.mrb[17].mxu0 }
 0x672   :  { %v2327_v0 = vadd.f32 %v2326_v23, %v4974_v5  ;;  %v2346_v47 = vmul.f32 %v4974_v5, %v4974_v5  ;;  %v4979_v41 = vpop.f32.mrb[18].mxu0 }
 0x673   :  { %v2356_v26 = vadd.f32 %v2355_v44, %v2345_v52  ;;  %v2315_v37 = vadd.f32 %v2314_v46, %v4979_v41  ;;  %v2347_v4 = vmul.f32 %v4979_v41, %v4979_v41  ;;  %v4984_v17 = vpop.f32.mrb[19].mxu0 }
 0x674   :  { %v2369_v55 = vadd.f32 %v2368_v20, %v2346_v47  ;;  %v2328_v54 = vadd.f32 %v2327_v0, %v4984_v17  ;;  %v2348_v18 = vmul.f32 %v4984_v17, %v4984_v17 }
 0x675   :  { %v2357_v11 = vadd.f32 %v2356_v26, %v2347_v4 }
 0x676   :  { %v2370_v24 = vadd.f32 %v2369_v55, %v2348_v18 }
 0x678   :  { %v4989_v10 = vpop.f32.mrb[20].mxu0 }
 0x679   :  { %v2316_v2 = vadd.f32 %v2315_v37, %v4989_v10  ;;  %v2349_v63 = vmul.f32 %v4989_v10, %v4989_v10  ;;  %v4994_v62 = vpop.f32.mrb[21].mxu0 }
 0x67a   :  { %v2329_v32 = vadd.f32 %v2328_v54, %v4994_v62  ;;  %v2350_v51 = vmul.f32 %v4994_v62, %v4994_v62  ;;  %v4999_v29 = vpop.f32.mrb[22].mxu0 }
 0x67b   :  { %v2358_v35 = vadd.f32 %v2357_v11, %v2349_v63  ;;  %v2317_v3 = vadd.f32 %v2316_v2, %v4999_v29  ;;  %v2351_v21 = vmul.f32 %v4999_v29, %v4999_v29  ;;  %v5004_v61 = vpop.f32.mrb[23].mxu0 }
 0x67c   :  { %v2371_v56 = vadd.f32 %v2370_v24, %v2350_v51  ;;  %v2330_v14 = vadd.f32 %v2329_v32, %v5004_v61  ;;  %v2352_v50 = vmul.f32 %v5004_v61, %v5004_v61  ;;  %v5366_v32 = vmov 0.0   ;;  %v3899_v51 = vld [vmem:[%s5307_s11 + $0x4] ss:$8 sps:$4 sm:$0xff]  }
 0x67d   :  { %v2318_v6 = vrot.slane %v2317_v3, 4  ;;  %v2359_v43 = vadd.f32 %v2358_v35, %v2351_v21 }
 0x67e   :  { %v2331_v38 = vrot.slane %v2330_v14, 4  ;;  %v2372_v39 = vadd.f32 %v2371_v56, %v2352_v50 }
 0x67f   :  { %v2319_v8 = vadd.f32 %v2318_v6, %v2317_v3  ;;  %v2360_v1 = vrot.slane %v2359_v43, 4 }
 0x680   :  { %v2332_v53 = vadd.f32 %v2331_v38, %v2330_v14  ;;  %v2373_v45 = vrot.slane %v2372_v39, 4 }
 0x681   :  { %v2320_v12 = vrot.slane %v2319_v8, 2  ;;  %v2361_v49 = vadd.f32 %v2360_v1, %v2359_v43 }
 0x682   :  { %v2333_v23 = vrot.slane %v2332_v53, 2  ;;  %v2374_v59 = vadd.f32 %v2373_v45, %v2372_v39  ;;  %v2478_v45 = vld [vmem:[%s5306_s10] sm:$0x1] }
 0x683   :  { %v2321_v44 = vadd.f32 %v2320_v12, %v2319_v8  ;;  %v2362_v20 = vrot.slane %v2361_v49, 2  ;;  %v2457_v8 = vld [vmem:[%s5305_s9] sm:$0x1] }
 0x684   :  { %v2334_v46 = vadd.f32 %v2333_v23, %v2332_v53  ;;  %v2375_v52 = vrot.slane %v2374_v59, 2 }
 0x685   :  { %v2322_v0 = vrot.slane %v2321_v44, 1  ;;  %v2363_v47 = vadd.f32 %v2362_v20, %v2361_v49 }
 0x686   :  { %v2335_v26 = vrot.slane %v2334_v46, 1  ;;  %v2376_v37 = vadd.f32 %v2375_v52, %v2374_v59  ;;  %v3897_v59 = vld [vmem:[%s5307_s11] ss:$8 sps:$4 sm:$0xff]   ;;  %v5367_v52 = vmov 0  }
 0x687   :  { %v2364_v4 = vrot.slane %v2363_v47, 1  ;;  %v2323_v54 = vadd.f32 %v2322_v0, %v2321_v44  ;;  %v3902_v44 = vld [vmem:[%s5307_s11 + $0x14] ss:$8 sps:$4 sm:$0xff]   ;;  %v3905_v0 = vld [vmem:[%s5307_s11 + $0x24] ss:$8 sps:$4 sm:$0xff]  }
 0x688   :  { %v2377_v55 = vrot.slane %v2376_v37, 1  ;;  %v2336_v11 = vadd.f32 %v2335_v26, %v2334_v46  ;;  %v3900_v46 = vld [vmem:[%s5307_s11 + $0x10] ss:$8 sps:$4 sm:$0xff]   ;;  %v3908_v26 = vld [vmem:[%s5307_s11 + $0x34] ss:$8 sps:$4 sm:$0xff]  }
 0x689   :  { %v2365_v18 = vadd.f32 %v2364_v4, %v2363_v47  ;;  %v3903_v47 = vld [vmem:[%s5307_s11 + $0x20] ss:$8 sps:$4 sm:$0xff]   ;;  %v3911_v4 = vld [vmem:[%s5307_s11 + $0x44] ss:$8 sps:$4 sm:$0xff]  }
 0x68a   :  { %v2378_v24 = vadd.f32 %v2377_v55, %v2376_v37  ;;  %v3906_v37 = vld [vmem:[%s5307_s11 + $0x30] ss:$8 sps:$4 sm:$0xff]   ;;  %v3909_v55 = vld [vmem:[%s5307_s11 + $0x40] ss:$8 sps:$4 sm:$0xff]  }
 0x68b   :  { %v2379_v2 = vsel %vm1095_vm13, %v2323_v54, %v2365_v18  ;;  %v3914_v54 = vld [vmem:[%s5307_s11 + $0x54] ss:$8 sps:$4 sm:$0xff]   ;;  %v3912_v18 = vld [vmem:[%s5307_s11 + $0x50] ss:$8 sps:$4 sm:$0xff]  }
 0x68c   :  { %v2380_v63 = vsel %vm1095_vm13, %v2336_v11, %v2378_v24  ;;  %v3917_v11 = vld [vmem:[%s5307_s11 + $0x64] ss:$8 sps:$4 sm:$0xff]   ;;  %v3915_v24 = vld [vmem:[%s5307_s11 + $0x60] ss:$8 sps:$4 sm:$0xff]  }
 0x68d   :  { %2445 = vmatprep.mubr.f32.mxu1 %v2380_v63  ;;  %v3918_v63 = vld [vmem:[%s5307_s11 + $0x70] ss:$8 sps:$4 sm:$0xff]  }
 0x68e   :  { %2446 = vmatmul.mubr.f32.vlgmr.msra.gmra.mrb[26].mxu1 %v2379_v2  ;;  %v3920_v2 = vld [vmem:[%s5307_s11 + $0x74] ss:$8 sps:$4 sm:$0xff]  }
 0x68f   :  { %2492 = vmatpush1.msra.mxu1 %v4548_v42  ;;  %2555 = vmatprep.mubr.f32.mxu1 %v5366_v32 }
 0x690   :  { %2706 = vmatprep.subr.bf16.mxu1 %v3899_v51  ;;  %v5368_v51 = vld [vmem:[#allocation12_spill] sm:$0xff] }
 0x761   :  { %v3438_v35 = vpop.f32.mrb[26].mxu1 }
 0x762   :  { %v3439_v3 = vpop.f32.mrb[27].mxu1 }
 0x763   :  { %v3440_v21 = vadd.f32 %v3439_v3, %v3438_v35  ;;  %v5369_v35 = vld [vmem:[#allocation11_spill] sm:$0xff]  ;;  %v5375_v3 = vld [vmem:[#allocation13_spill] sm:$0xff] }
 0x765   :  { %v2451_v56 = vmul.f32 0.00048828125, %v3440_v21 }
 0x767   :  { %v2452_v14 = vmul.f32 %v2451_v56, %v2451_v56 }
 0x769   :  { %v2454_v50 = vrot.slane %v2452_v14, 7 }
 0x76b   :  { %v2456_v6 = vsub.f32 %v2451_v56, %v2454_v50  ;;  %v5379_v50 = vld [vmem:[#allocation22_spill] sm:$0xff] }
 0x76d   :  { %v2458_v43 = vadd.f32 1e-05, %v2456_v6 }
 0x76f   :  { %3923 = vrsqrt.f32 %v2458_v43 }
 0x779   :  { %v3924_v38 = vpop.eup %3923 }
 0x77a   :  { %v2467_v39 = vrot.slane %v3924_v38, %v4553_v15 }
 0x77c   :  { %v2468_v42 = vcombine.high %v2467_v39, %v2467_v39 }
 0x77e   :  { %v2475_v1 = vrot.slane %v2468_v42, %v4553_v15 }
 0x780   :  { %v2477_v53 = vmul.f32 %v2475_v1, %v2457_v8 }
 0x782   :  { %v2479_v12 = vmul.f32 %v2477_v53, %v2451_v56 }
 0x784   :  { %v2480_v49 = vsub.f32 %v2478_v45, %v2479_v12 }
 0x786   :  { %v2485_v23 = vrot.slane %v2480_v49, %v4564_v40 }
 0x788   :  { %v2487_v20 = vsel %vm1095_vm13, %v2477_v53, %v2485_v23 }
 0x789   :  { %3341 = vmatmul.mubr.msk.f32.vlgmr.msra.gmra.mrb[28].mxu1 %vm1239_vm14, %v2487_v20 }
 0x78a   :  { %2707 = vmatpush1.bf16.msra.mxu1 %v3897_v59  ;;  %2738 = vmatprep.mubr.bf16.mxu1 %v5367_v52 }
 0x78b   :  { %2708 = vmatprep.subr.bf16.mxu1 %v3902_v44 }
 0x78e   :  { %2709 = vmatpush1.bf16.msra.mxu1 %v3900_v46 }
 0x78f   :  { %2710 = vmatprep.subr.bf16.mxu1 %v3905_v0 }
 0x792   :  { %2711 = vmatpush1.bf16.msra.mxu1 %v3903_v47 }
 0x793   :  { %2712 = vmatprep.subr.bf16.mxu1 %v3908_v26 }
 0x796   :  { %2713 = vmatpush1.bf16.msra.mxu1 %v3906_v37 }
 0x797   :  { %2714 = vmatprep.subr.bf16.mxu1 %v3911_v4 }
 0x79a   :  { %2715 = vmatpush1.bf16.msra.mxu1 %v3909_v55 }
 0x79b   :  { %2716 = vmatprep.subr.bf16.mxu1 %v3914_v54 }
 0x79e   :  { %2717 = vmatpush1.bf16.msra.mxu1 %v3912_v18 }
 0x79f   :  { %2718 = vmatprep.subr.bf16.mxu1 %v3917_v11 }
 0x7a2   :  { %2719 = vmatpush1.bf16.msra.mxu1 %v3915_v24 }
 0x7a3   :  { %2720 = vmatprep.subr.bf16.mxu1 %v3920_v2 }
 0x7a6   :  { %2721 = vmatpush1.bf16.msra.mxu1 %v3918_v63 }
 0x7a7   :  { %3565 = vmatprep.subr.bf16.mxu1 %v4306_v9  ;;  %v5370_v9 = vld [vmem:[#allocation14_spill] sm:$0xff] }
 0x7a9   :  { %2739 = vmatmul.mubr.bf16.vlgmr.msra.gmra.mrb[32].mxu1 %v5368_v51 }
 0x7aa   :  { %2748 = vmatprep.mubr.bf16.mxu1 %v5367_v52  ;;  %3567 = vmatpush3.bf16.msra.mxu1 %v4314_v13  ;;  %v5371_v13 = vld [vmem:[#allocation15_spill] sm:$0xff] }
 0x7ab   :  { %3569 = vmatprep.subr.bf16.mxu1 %v4324_v16  ;;  %v5372_v16 = vld [vmem:[#allocation16_spill] sm:$0xff] }
 0x7ae   :  { %3571 = vmatpush3.bf16.msra.mxu1 %v4332_v19  ;;  %v5373_v19 = vld [vmem:[#allocation17_spill] sm:$0xff] }
 0x7af   :  { %3573 = vmatprep.subr.bf16.mxu1 %v4342_v22  ;;  %v5374_v22 = vld [vmem:[#allocation18_spill] sm:$0xff] }
 0x7b1   :  { %2749 = vmatmul.mubr.bf16.gmra.mrb[36].mxu1 %v5369_v35 }
 0x7b2   :  { %2758 = vmatprep.mubr.bf16.mxu1 %v5367_v52  ;;  %3575 = vmatpush3.bf16.msra.mxu1 %v4350_v25  ;;  %v5376_v25 = vld [vmem:[#allocation19_spill] sm:$0xff] }
 0x7b3   :  { %3577 = vmatprep.subr.bf16.mxu1 %v4360_v28  ;;  %v5377_v28 = vld [vmem:[#allocation20_spill] sm:$0xff] }
 0x7b6   :  { %3579 = vmatpush3.bf16.msra.mxu1 %v4368_v31  ;;  %v5378_v31 = vld [vmem:[#allocation21_spill] sm:$0xff] }
 0x7b7   :  { %3581 = vmatprep.subr.bf16.mxu1 %v4378_v36  ;;  %v3927_v36 = vld [vmem:[%s5299_s3 + $0x8] sm:$0xff] }
 0x7b9   :  { %2759 = vmatmul.mubr.bf16.gmra.mrb[40].mxu1 %v5370_v9 }
 0x7ba   :  { %2768 = vmatprep.mubr.bf16.mxu1 %v5367_v52  ;;  %3583 = vmatpush3.bf16.msra.mxu1 %v5371_v13 }
 0x7bb   :  { %3585 = vmatprep.subr.bf16.mxu1 %v5372_v16 }
 0x7be   :  { %3587 = vmatpush3.bf16.msra.mxu1 %v5373_v19 }
 0x7bf   :  { %3589 = vmatprep.subr.bf16.mxu1 %v5374_v22 }
 0x7c1   :  { %2769 = vmatmul.mubr.bf16.gmra.mrb[44].mxu1 %v5375_v3 }
 0x7c2   :  { %3591 = vmatpush3.bf16.msra.mxu1 %v5376_v25 }
 0x7c3   :  { %3593 = vmatprep.subr.bf16.mxu1 %v5377_v28 }
 0x7c6   :  { %3595 = vmatpush3.bf16.msra.mxu1 %v5378_v31 }
 0x7c7   :  { %2959 = vmatprep.subr.mxu1 %v3927_v36 }
 0x85c   :  { %v2557_v21 = vpop.f32.mrb[28].mxu1 }
 0x85d   :  { %v2565_v56 = vrot.slane %v2557_v21, %v4564_v40  ;;  %v2559_v14 = vpop.f32.mrb[29].mxu1  ;;  %v2589_v6 = vrot.slane %v2557_v21, %v5379_v50 }
 0x85e   :  { %v2569_v43 = vrot.slane %v2559_v14, %v4564_v40  ;;  %v2593_v38 = vrot.slane %v2559_v14, %v5379_v50 }
 0x85f   :  { %v2570_v39 = vmul.f32 %v2565_v56, %v4929_v7  ;;  %v2572_v42 = vmul.f32 %v2565_v56, %v4933_v57  ;;  %v2574_v8 = vmul.f32 %v2565_v56, %v4949_v27  ;;  %v2576_v1 = vmul.f32 %v2565_v56, %v4959_v60 }
 0x860   :  { %v2578_v53 = vmul.f32 %v2565_v56, %v4969_v48  ;;  %v2580_v45 = vmul.f32 %v2565_v56, %v4979_v41  ;;  %v2582_v12 = vmul.f32 %v2565_v56, %v4989_v10  ;;  %v2584_v49 = vmul.f32 %v2565_v56, %v4999_v29 }
 0x861   :  { %v5111_v23 = vadd.f32 %v2589_v6, %v2570_v39  ;;  %v5113_v59 = vadd.f32 %v2589_v6, %v2572_v42  ;;  %v5115_v44 = vadd.f32 %v2589_v6, %v2574_v8  ;;  %v5117_v7 = vadd.f32 %v2589_v6, %v2576_v1 }
 0x862   :  { %v5119_v57 = vadd.f32 %v2589_v6, %v2578_v53  ;;  %v5121_v27 = vadd.f32 %v2589_v6, %v2580_v45  ;;  %v5123_v60 = vadd.f32 %v2589_v6, %v2582_v12  ;;  %v5125_v48 = vadd.f32 %v2589_v6, %v2584_v49 }
 0x863   :  { %v2571_v41 = vmul.f32 %v2569_v43, %v4931_v30  ;;  %v2573_v10 = vmul.f32 %v2569_v43, %v4941_v58  ;;  %v2575_v29 = vmul.f32 %v2569_v43, %v4954_v33  ;;  %v2577_v20 = vmul.f32 %v2569_v43, %v4964_v34 }
 0x864   :  { %v2579_v46 = vmul.f32 %v2569_v43, %v4974_v5  ;;  %v2581_v52 = vmul.f32 %v2569_v43, %v4984_v17  ;;  %v2583_v0 = vmul.f32 %v2569_v43, %v4994_v62  ;;  %v2585_v47 = vmul.f32 %v2569_v43, %v5004_v61 }
 0x865   :  { %v5135_v26 = vadd.f32 %v2593_v38, %v2571_v41  ;;  %v5137_v37 = vadd.f32 %v2593_v38, %v2573_v10  ;;  %v5139_v4 = vadd.f32 %v2593_v38, %v2575_v29  ;;  %v5141_v30 = vadd.f32 %v2593_v38, %v2577_v20 }
 0x866   :  { %v5143_v58 = vadd.f32 %v2593_v38, %v2579_v46  ;;  %v5145_v33 = vadd.f32 %v2593_v38, %v2581_v52  ;;  %v5147_v34 = vadd.f32 %v2593_v38, %v2583_v0  ;;  %v5149_v5 = vadd.f32 %v2593_v38, %v2585_v47 }
 0x87c   :  { %v5151_v17 = vpop.f32.mrb[32].mxu1 }
 0x87d   :  { %v5153_v62 = vpop.f32.mrb[33].mxu1  ;;  %v2805_v55 = vmul.f32 %v5151_v17, %v5151_v17 }
 0x87e   :  { %v5155_v61 = vpop.f32.mrb[34].mxu1  ;;  %v2806_v24 = vmul.f32 %v5153_v62, %v5153_v62 }
 0x87f   :  { %v2779_v54 = vadd.f32 %v5155_v61, %v5151_v17  ;;  %v2807_v18 = vmul.f32 %v5155_v61, %v5155_v61  ;;  %v5163_v11 = vpop.f32.mrb[35].mxu1 }
 0x880   :  { %v2792_v2 = vadd.f32 %v5163_v11, %v5153_v62  ;;  %v2808_v63 = vmul.f32 %v5163_v11, %v5163_v11 }
 0x881   :  { %v2821_v51 = vadd.f32 %v2807_v18, %v2805_v55 }
 0x882   :  { %v2834_v35 = vadd.f32 %v2808_v63, %v2806_v24 }
 0x884   :  { %v5171_v9 = vpop.f32.mrb[36].mxu1 }
 0x885   :  { %v2780_v13 = vadd.f32 %v2779_v54, %v5171_v9  ;;  %v2809_v16 = vmul.f32 %v5171_v9, %v5171_v9  ;;  %v5176_v19 = vpop.f32.mrb[37].mxu1 }
 0x886   :  { %v2793_v22 = vadd.f32 %v2792_v2, %v5176_v19  ;;  %v2810_v3 = vmul.f32 %v5176_v19, %v5176_v19  ;;  %v5181_v25 = vpop.f32.mrb[38].mxu1 }
 0x887   :  { %v2822_v28 = vadd.f32 %v2821_v51, %v2809_v16  ;;  %v2781_v31 = vadd.f32 %v2780_v13, %v5181_v25  ;;  %v2811_v36 = vmul.f32 %v5181_v25, %v5181_v25  ;;  %v5186_v21 = vpop.f32.mrb[39].mxu1 }
 0x888   :  { %v2835_v56 = vadd.f32 %v2834_v35, %v2810_v3  ;;  %v2794_v14 = vadd.f32 %v2793_v22, %v5186_v21  ;;  %v2812_v6 = vmul.f32 %v5186_v21, %v5186_v21 }
 0x889   :  { %v2823_v43 = vadd.f32 %v2822_v28, %v2811_v36 }
 0x88a   :  { %v2836_v38 = vadd.f32 %v2835_v56, %v2812_v6 }
 0x88c   :  { %v5191_v39 = vpop.f32.mrb[40].mxu1 }
 0x88d   :  { %v2782_v42 = vadd.f32 %v2781_v31, %v5191_v39  ;;  %v2813_v8 = vmul.f32 %v5191_v39, %v5191_v39  ;;  %v5196_v1 = vpop.f32.mrb[41].mxu1 }
 0x88e   :  { %v2795_v53 = vadd.f32 %v2794_v14, %v5196_v1  ;;  %v2814_v45 = vmul.f32 %v5196_v1, %v5196_v1  ;;  %v5201_v12 = vpop.f32.mrb[42].mxu1 }
 0x88f   :  { %v2824_v49 = vadd.f32 %v2823_v43, %v2813_v8  ;;  %v2783_v41 = vadd.f32 %v2782_v42, %v5201_v12  ;;  %v2815_v10 = vmul.f32 %v5201_v12, %v5201_v12  ;;  %v5206_v29 = vpop.f32.mrb[43].mxu1 }
 0x890   :  { %v2837_v20 = vadd.f32 %v2836_v38, %v2814_v45  ;;  %v2796_v46 = vadd.f32 %v2795_v53, %v5206_v29  ;;  %v2816_v52 = vmul.f32 %v5206_v29, %v5206_v29 }
 0x891   :  { %v2825_v0 = vadd.f32 %v2824_v49, %v2815_v10 }
 0x892   :  { %v2838_v47 = vadd.f32 %v2837_v20, %v2816_v52 }
 0x894   :  { %v5211_v55 = vpop.f32.mrb[44].mxu1 }
 0x895   :  { %v2784_v54 = vadd.f32 %v2783_v41, %v5211_v55  ;;  %v2817_v18 = vmul.f32 %v5211_v55, %v5211_v55  ;;  %v5216_v24 = vpop.f32.mrb[45].mxu1 }
 0x896   :  { %v2797_v2 = vadd.f32 %v2796_v46, %v5216_v24  ;;  %v2818_v63 = vmul.f32 %v5216_v24, %v5216_v24  ;;  %v5221_v51 = vpop.f32.mrb[46].mxu1 }
 0x897   :  { %v2826_v35 = vadd.f32 %v2825_v0, %v2817_v18  ;;  %v2785_v13 = vadd.f32 %v2784_v54, %v5221_v51  ;;  %v2819_v16 = vmul.f32 %v5221_v51, %v5221_v51  ;;  %v5226_v22 = vpop.f32.mrb[47].mxu1 }
 0x898   :  { %v2839_v3 = vadd.f32 %v2838_v47, %v2818_v63  ;;  %v2798_v28 = vadd.f32 %v2797_v2, %v5226_v22  ;;  %v2820_v31 = vmul.f32 %v5226_v22, %v5226_v22 }
 0x899   :  { %v2786_v36 = vrot.slane %v2785_v13, 4  ;;  %v2827_v56 = vadd.f32 %v2826_v35, %v2819_v16 }
 0x89a   :  { %v2799_v14 = vrot.slane %v2798_v28, 4  ;;  %v2840_v6 = vadd.f32 %v2839_v3, %v2820_v31 }
 0x89b   :  { %v2787_v43 = vadd.f32 %v2786_v36, %v2785_v13  ;;  %v2828_v38 = vrot.slane %v2827_v56, 4  ;;  %v3928_v36 = vld [vmem:[%s5299_s3] sm:$0xff] }
 0x89c   :  { %v2800_v42 = vadd.f32 %v2799_v14, %v2798_v28  ;;  %v2841_v8 = vrot.slane %v2840_v6, 4 }
 0x89d   :  { %v2788_v53 = vrot.slane %v2787_v43, 2  ;;  %v2829_v45 = vadd.f32 %v2828_v38, %v2827_v56 }
 0x89e   :  { %v2801_v49 = vrot.slane %v2800_v42, 2  ;;  %v2842_v41 = vadd.f32 %v2841_v8, %v2840_v6 }
 0x89f   :  { %v2789_v10 = vadd.f32 %v2788_v53, %v2787_v43  ;;  %v2830_v20 = vrot.slane %v2829_v45, 2 }
 0x8a0   :  { %v2802_v46 = vadd.f32 %v2801_v49, %v2800_v42  ;;  %v2843_v52 = vrot.slane %v2842_v41, 2 }
 0x8a1   :  { %v2790_v0 = vrot.slane %v2789_v10, 1  ;;  %v2831_v47 = vadd.f32 %v2830_v20, %v2829_v45 }
 0x8a2   :  { %v2803_v54 = vrot.slane %v2802_v46, 1  ;;  %v2844_v18 = vadd.f32 %v2843_v52, %v2842_v41 }
 0x8a3   :  { %v2832_v2 = vrot.slane %v2831_v47, 1  ;;  %v2791_v35 = vadd.f32 %v2790_v0, %v2789_v10  ;;  %v2925_v10 = vld [vmem:[%s5308_s12] sm:$0x1]  ;;  %s4009_s12 = smov [#allocation7]  }
 0x8a4   :  { %v2845_v63 = vrot.slane %v2844_v18, 1  ;;  %v2804_v13 = vadd.f32 %v2803_v54, %v2802_v46  ;;  %v2946_v46 = vld [vmem:[%s5309_s13] sm:$0x1]  ;;  %s3131_s13 = sshll.u32 %s4009_s12, 4  ;;  %s3132_s13 = int_to_ptr.vmem [resolvable:$true] %s3131_s13 }
 0x8a5   :  { %v2833_v16 = vadd.f32 %v2832_v2, %v2831_v47  ;;  %s3973_s30 = scalar_lea.vmem %s3132_s13, 2048  ;;  %p3978_p3 = scmp.lt.s32.totalorder %s3132_s13, %s3132_s13 }
 0x8a6   :  { %v2846_v3 = vadd.f32 %v2845_v63, %v2844_v18  ;;  %p3974_p2 = scmp.ne.s32.totalorder %s3132_s13, %s3973_s30  ;;  %p3979_p4 = scmp.lt.s32.totalorder %s3973_s30, %s3973_s30 }
 0x8a7   :  { %v2847_v28 = vsel %vm1095_vm13, %v2791_v35, %v2833_v16 }
 0x8a8   :  { %v2848_v31 = vsel %vm1095_vm13, %v2804_v13, %v2846_v3  ;;  %p3980_p5 = por %p3979_p4, %p3978_p3 }
 0x8a9   :  { %2913 = vmatprep.mubr.f32.mxu1 %v2848_v31 }
 0x8aa   :  { %2914 = vmatmul.mubr.f32.vlgmr.msra.gmra.mrb[30].mxu1 %v2847_v28  ;;  %p3981_p6 = pnand %p3980_p5, %p3974_p2 }
 0x8ab   :  { %2960 = vmatpush1.msra.mxu1 %v3928_v36  ;;  %3023 = vmatprep.mubr.f32.mxu1 %v5366_v32 }
 0x97d   :  { %v3473_v56 = vpop.f32.mrb[30].mxu1 }
 0x97e   :  { %v3474_v14 = vpop.f32.mrb[31].mxu1 }
 0x97f   :  { %v3475_v6 = vadd.f32 %v3474_v14, %v3473_v56 }
 0x981   :  { %v2919_v43 = vmul.f32 0.00048828125, %v3475_v6 }
 0x983   :  { %v2920_v38 = vmul.f32 %v2919_v43, %v2919_v43 }
 0x985   :  { %v2922_v42 = vrot.slane %v2920_v38, 7 }
 0x987   :  { %v2924_v8 = vsub.f32 %v2919_v43, %v2922_v42 }
 0x989   :  { %v2926_v53 = vadd.f32 1e-05, %v2924_v8 }
 0x98b   :  { %3925 = vrsqrt.f32 %v2926_v53 }
 0x995   :  { %v3926_v45 = vpop.eup %3925 }
 0x996   :  { %v2935_v49 = vrot.slane %v3926_v45, %v4553_v15 }
 0x998   :  { %v2936_v41 = vcombine.high %v2935_v49, %v2935_v49 }
 0x99a   :  { %v2943_v20 = vrot.slane %v2936_v41, %v4553_v15 }
 0x99c   :  { %v2945_v32 = vmul.f32 %v2943_v20, %v2925_v10 }
 0x99e   :  { %v2947_v52 = vmul.f32 %v2945_v32, %v2919_v43 }
 0x9a0   :  { %v2948_v0 = vsub.f32 %v2946_v46, %v2947_v52 }
 0x9a2   :  { %v2953_v47 = vrot.slane %v2948_v0, %v4564_v40 }
 0x9a4   :  { %v2955_v54 = vsel %vm1095_vm13, %v2945_v32, %v2953_v47 }
 0x9a5   :  { %3358 = vmatmul.mubr.msk.f32.vlgmr.msra.gmra.mrb[48].mxu1 %vm1239_vm14, %v2955_v54 }
 0xa78   :  { %v3025_v18 = vpop.f32.mrb[48].mxu1 }
 0xa79   :  { %v3033_v2 = vrot.slane %v3025_v18, %v4564_v40  ;;  %v3027_v63 = vpop.f32.mrb[49].mxu1  ;;  %v3057_v35 = vrot.slane %v3025_v18, %v5379_v50 }
 0xa7a   :  { %v3037_v15 = vrot.slane %v3027_v63, %v4564_v40  ;;  %v3061_v16 = vrot.slane %v3027_v63, %v5379_v50 }
 0xa7b   :  { %v3038_v13 = vmul.f32 %v3033_v2, %v5151_v17  ;;  %v3040_v3 = vmul.f32 %v3033_v2, %v5155_v61  ;;  %v3042_v28 = vmul.f32 %v3033_v2, %v5171_v9  ;;  %v3044_v31 = vmul.f32 %v3033_v2, %v5181_v25 }
 0xa7c   :  { %v3046_v36 = vmul.f32 %v3033_v2, %v5191_v39  ;;  %v3048_v56 = vmul.f32 %v3033_v2, %v5201_v12  ;;  %v3050_v14 = vmul.f32 %v3033_v2, %v5211_v55  ;;  %v3052_v6 = vmul.f32 %v3033_v2, %v5221_v51 }
 0xa7d   :  { %v3062_v43 = vadd.f32 %v3057_v35, %v3038_v13  ;;  %v3064_v40 = vadd.f32 %v3057_v35, %v3040_v3  ;;  %v3066_v38 = vadd.f32 %v3057_v35, %v3042_v28  ;;  %v3068_v50 = vadd.f32 %v3057_v35, %v3044_v31 }
 0xa7e   :  { %v3070_v42 = vadd.f32 %v3057_v35, %v3046_v36  ;;  %v3072_v17 = vadd.f32 %v3057_v35, %v3048_v56  ;;  %v3074_v8 = vadd.f32 %v3057_v35, %v3050_v14  ;;  %v3076_v61 = vadd.f32 %v3057_v35, %v3052_v6 }
 0xa7f   :  { %v3078_v9 = vadd.f32 %v3062_v43, %v5111_v23  ;;  %v3080_v25 = vadd.f32 %v3064_v40, %v5113_v59  ;;  %v3082_v39 = vadd.f32 %v3066_v38, %v5115_v44  ;;  %v3084_v12 = vadd.f32 %v3068_v50, %v5117_v7 }
 0xa80   :  { %v3086_v55 = vadd.f32 %v3070_v42, %v5119_v57  ;;  %v3088_v51 = vadd.f32 %v3072_v17, %v5121_v27  ;;  %v3090_v53 = vadd.f32 %v3074_v8, %v5123_v60  ;;  %v3092_v45 = vadd.f32 %v3076_v61, %v5125_v48 }
 0xa81   :  { %v3094_v49 = vmax.f32 %v3078_v9, 0.0  ;;  %v3096_v41 = vmax.f32 %v3080_v25, 0.0  ;;  %v3098_v10 = vmax.f32 %v3082_v39, 0.0  ;;  %v3100_v20 = vmax.f32 %v3084_v12, 0.0 }
 0xa82   :  { %v3102_v32 = vmax.f32 %v3086_v55, 0.0  ;;  %v3104_v23 = vmax.f32 %v3088_v51, 0.0  ;;  %v3106_v46 = vmax.f32 %v3090_v53, 0.0  ;;  %v3108_v59 = vmax.f32 %v3092_v45, 0.0 }
 0xa83   :  { %3110 = vst [vmem:[#allocation7] sm:$0xff] %v3094_v49  ;;  %3112 = vst [vmem:[#allocation7 + $0x10] sm:$0xff] %v3096_v41  ;;  %v3039_v44 = vmul.f32 %v3037_v15, %v5153_v62  ;;  %v3041_v7 = vmul.f32 %v3037_v15, %v5163_v11  ;;  %v3043_v57 = vmul.f32 %v3037_v15, %v5176_v19 }
 0xa84   :  { %3114 = vst [vmem:[#allocation7 + $0x20] sm:$0xff] %v3098_v10  ;;  %3116 = vst [vmem:[#allocation7 + $0x30] sm:$0xff] %v3100_v20  ;;  %v3045_v27 = vmul.f32 %v3037_v15, %v5186_v21  ;;  %v3047_v60 = vmul.f32 %v3037_v15, %v5196_v1  ;;  %v3049_v48 = vmul.f32 %v3037_v15, %v5206_v29 }
 0xa85   :  { %3118 = vst [vmem:[#allocation7 + $0x40] sm:$0xff] %v3102_v32  ;;  %3120 = vst [vmem:[#allocation7 + $0x50] sm:$0xff] %v3104_v23  ;;  %v3051_v52 = vmul.f32 %v3037_v15, %v5216_v24  ;;  %v3053_v0 = vmul.f32 %v3037_v15, %v5226_v22  ;;  %v3063_v47 = vadd.f32 %v3061_v16, %v3039_v44 }
 0xa86   :  { %3122 = vst [vmem:[#allocation7 + $0x60] sm:$0xff] %v3106_v46  ;;  %3124 = vst [vmem:[#allocation7 + $0x70] sm:$0xff] %v3108_v59  ;;  %v3065_v62 = vadd.f32 %v3061_v16, %v3041_v7  ;;  %v3067_v54 = vadd.f32 %v3061_v16, %v3043_v57  ;;  %v3069_v11 = vadd.f32 %v3061_v16, %v3045_v27 }
 0xa87   :  { %v3071_v18 = vadd.f32 %v3061_v16, %v3047_v60  ;;  %v3073_v19 = vadd.f32 %v3061_v16, %v3049_v48  ;;  %v3075_v2 = vadd.f32 %v3061_v16, %v3051_v52  ;;  %v3077_v21 = vadd.f32 %v3061_v16, %v3053_v0 }
 0xa88   :  { %v3079_v63 = vadd.f32 %v3063_v47, %v5135_v26  ;;  %v3081_v35 = vadd.f32 %v3065_v62, %v5137_v37  ;;  %v3083_v1 = vadd.f32 %v3067_v54, %v5139_v4  ;;  %v3085_v29 = vadd.f32 %v3069_v11, %v5141_v30 }
 0xa89   :  { %v3087_v24 = vadd.f32 %v3071_v18, %v5143_v58  ;;  %v3089_v22 = vadd.f32 %v3073_v19, %v5145_v33  ;;  %v3091_v15 = vadd.f32 %v3075_v2, %v5147_v34  ;;  %v3093_v13 = vadd.f32 %v3077_v21, %v5149_v5 }
 0xa8a   :  { %v3095_v3 = vmax.f32 %v3079_v63, 0.0  ;;  %v3097_v16 = vmax.f32 %v3081_v35, 0.0  ;;  %v3099_v28 = vmax.f32 %v3083_v1, 0.0  ;;  %v3101_v26 = vmax.f32 %v3085_v29, 0.0 }
 0xa8b   :  { %v3103_v31 = vmax.f32 %v3087_v24, 0.0  ;;  %v3105_v37 = vmax.f32 %v3089_v22, 0.0  ;;  %v3107_v36 = vmax.f32 %v3091_v15, 0.0  ;;  %v3109_v4 = vmax.f32 %v3093_v13, 0.0 }
 0xa8c   :  { %3111 = vst [vmem:[#allocation7 + $0x8] sm:$0xff] %v3095_v3  ;;  %3113 = vst [vmem:[#allocation7 + $0x18] sm:$0xff] %v3097_v16 }
 0xa8d   :  { %3115 = vst [vmem:[#allocation7 + $0x28] sm:$0xff] %v3099_v28  ;;  %3117 = vst [vmem:[#allocation7 + $0x38] sm:$0xff] %v3101_v26 }
 0xa8e   :  { %3119 = vst [vmem:[#allocation7 + $0x48] sm:$0xff] %v3103_v31  ;;  %3121 = vst [vmem:[#allocation7 + $0x58] sm:$0xff] %v3105_v37 }
 0xa8f   :  { %3123 = vst [vmem:[#allocation7 + $0x68] sm:$0xff] %v3107_v36  ;;  %3125 = vst [vmem:[#allocation7 + $0x78] sm:$0xff] %v3109_v4 }
 0xa90   :  { %3984 = shalt.err (!%p3981_p6)
}
 0xa91   :  { %s3985_s22 = scalar_lea.hbm %s5310_s14, 2048 }
 0xa92   :  { %p3986_p7 = scmp.ne.s32.totalorder %s5310_s14, %s3985_s22  ;;  %p3989_p8 = scmp.lt.u32.totalorder %s3985_s22, %s5310_s14 }
 0xa94   :  { %p3991_p9 = pnand %p3989_p8, %p3986_p7 }
 0xa96   :  { %3994 = shalt.err (!%p3991_p9)
}
 0xa97   :  { %s4010_s15 = smov 256   ;;  %s4011_s8 = smov 16  }
 0xa98   :  { %3137 = dma.vmem_to_hbm [thread:$0]  %s3132_s13, 2048, %s5310_s14, [#allocation4], %s4010_s15, %s4010_s15, %s4011_s8  }
 0xa99   :  { %3999 = dma.done.wait [#allocation4], 2048  }
 0xa9a   :  { %4000 = vsyncadd [#allocation4], 4294965248 }
 0xa9b   :  { %3141 = vsyncpa [#allocation3], 1 }
 0xa9c   :  { %3142 = vsyncpa [#allocation6], 1 }
 0xa9d   :  { %3143 = vsyncpa [#allocation4], 1 }

</bundles_post_ra>
